<compile_context>
chip_gen: v7x
topology: tpu7x:2x2x1
jax: 0.10.0
libtpu: 0.0.40
codegen_flags: <defaults>
</compile_context>

<pallas_src>
import functools

import jax
import jax.numpy as jnp
from jax import lax
from jax.experimental import pallas as pl
from jax.experimental.pallas import tpu as pltpu

BLOCK_SIZE = 256        # max context of the module (T must be <= this)
N_EMBD = 384
NUM_HEADS = 6
HEAD_SIZE = N_EMBD // NUM_HEADS


def _mha_fused_kernel(x_ref, wqkv_ref, wp_ref, bp_ref, o_ref, *, num_heads, head_size):
    # x_ref:    (1, T, C)   bf16
    # wqkv_ref: (C, 3C)     bf16   columns = [Q heads | K heads | V heads], Q pre-scaled
    # wp_ref:   (C, C)      bf16   (pre-transposed projection weight)
    # bp_ref:   (1, C)      f32
    # o_ref:    (1, T, C)   f32 or bf16
    T = x_ref.shape[1]
    C = x_ref.shape[2]
    hs = head_size

    x = x_ref[0]                                                          # (T, C) bf16

    # Fused QKV projection: one wide MXU matmul (M=T, K=C, N=3C).  Cast to bf16
    # once; the f32 qkv never stays live across the unrolled head loop.
    qkv = jnp.dot(x, wqkv_ref[...], preferred_element_type=jnp.float32)   # (T, 3C) f32
    qkv = qkv.astype(jnp.bfloat16)                                        # (T, 3C) bf16

    # Query tiling: 128 rows when possible (keeps live f32 score blocks small
    # and, with K-trimming, minimizes exp work).
    TQ = 128 if (T > 128 and T % 128 == 0) else T
    n_tiles = T // TQ

    # Causal additive bias for the diagonal TQ x TQ block — built ONCE per
    # kernel, reused by every (head, tile).  Off-diagonal key blocks to the
    # left of the diagonal are fully unmasked and need no bias at all.
    row = lax.broadcasted_iota(jnp.int32, (TQ, TQ), 0)
    col = lax.broadcasted_iota(jnp.int32, (TQ, TQ), 1)
    diag_bias = jnp.where(col <= row, 0.0, -1e30).astype(jnp.float32)     # (TQ, TQ)

    head_cols = []
    for h in range(num_heads):
        # Per-head slices hoisted out of the query-tile loop (done once per head).
        q_h = qkv[:, h * hs:(h + 1) * hs]                                 # (T, hs)
        k_h = qkv[:, C + h * hs:C + (h + 1) * hs]                         # (T, hs)
        v_h = qkv[:, 2 * C + h * hs:2 * C + (h + 1) * hs]                 # (T, hs)

        tiles = []
        for ti in range(n_tiles):
            qi = ti * TQ
            q_t = q_h[qi:qi + TQ]                                         # (TQ, hs)

            # Causality: this query tile only sees keys [0, qi + TQ).
            kblocks = list(range(0, qi + TQ, TQ))

            # Scores per key block (q @ k.T without materializing a transpose).
            s_blocks = []
            for kj in kblocks:
                s = lax.dot_general(q_t, k_h[kj:kj + TQ],
                                    (((1,), (1,)), ((), ())),
                                    preferred_element_type=jnp.float32)   # (TQ, TQ)
                if kj == qi:                      # diagonal block: causal mask
                    s = s + diag_bias
                s_blocks.append(s)

            # Numerically-stable softmax across the trimmed key range (f32).
            m = s_blocks[0].max(axis=-1, keepdims=True)
            for s in s_blocks[1:]:
                m = jnp.maximum(m, s.max(axis=-1, keepdims=True))

            p_blocks = [jnp.exp(s - m) for s in s_blocks]
            l = p_blocks[0].sum(axis=-1, keepdims=True)
            for p in p_blocks[1:]:
                l = l + p.sum(axis=-1, keepdims=True)

            # PV matmuls (bf16 operands, f32 accumulation).
            acc = None
            for bi, kj in enumerate(kblocks):
                pv = jnp.dot(p_blocks[bi].astype(jnp.bfloat16), v_h[kj:kj + TQ],
                             preferred_element_type=jnp.float32)          # (TQ, hs)
                acc = pv if acc is None else acc + pv

            # Normalize the f32 accumulator (EUP reciprocal) after the matmul.
            inv_l = pl.reciprocal(l, approx=True)
            tiles.append((acc * inv_l).astype(jnp.bfloat16))              # (TQ, hs)

        head_cols.append(tiles[0] if n_tiles == 1
                         else jnp.concatenate(tiles, axis=0))             # (T, hs)

    # Single fused output projection: (T, C) @ (C, C) — K=384 fills the MXU,
    # replacing six K=64 matmuls + f32 accumulate-adds per query tile.
    cat = jnp.concatenate(head_cols, axis=1)                              # (T, C) bf16
    out = jnp.dot(cat, wp_ref[...], preferred_element_type=jnp.float32) + bp_ref[...]
    o_ref[0] = out.astype(o_ref.dtype)                                    # lane-dense store


def multi_head_attention(x, wq, wk, wv, wp, bp, out_dtype=jnp.float32):
    """x: (B, T, C); wq/wk/wv: (H, C, hs); wp: (C, C) pre-transposed; bp: (C,)."""
    B, T, C = x.shape
    H, _, hs = wq.shape
    assert H * hs == C
    assert T <= BLOCK_SIZE

    # NOTE: the PyTorch module scales by C ** -0.5 with C = n_embd (not head_size).
    # Fold the scale into the Q weight columns so no per-element scaling is done
    # in the kernel.
    scale = jnp.float32(C) ** jnp.float32(-0.5)

    # Pack all heads' Q, K, V weights into one (C, 3C) matrix:
    # columns = [Q_h0..Q_h{H-1} | K_h0.. | V_h0..].
    wq_all = wq.transpose(1, 0, 2).reshape(C, C) * scale
    wk_all = wk.transpose(1, 0, 2).reshape(C, C)
    wv_all = wv.transpose(1, 0, 2).reshape(C, C)
    wqkv = jnp.concatenate([wq_all, wk_all, wv_all], axis=1)             # (C, 3C)

    # bf16 MXU operands; bias and all accumulation stay f32.
    x_bf = x.astype(jnp.bfloat16)
    wqkv_bf = wqkv.astype(jnp.bfloat16)
    wp_bf = wp.astype(jnp.bfloat16)
    bp2 = bp.reshape(1, C).astype(jnp.float32)

    kernel = functools.partial(_mha_fused_kernel, num_heads=H, head_size=hs)

    return pl.pallas_call(
        kernel,
        out_shape=jax.ShapeDtypeStruct((B, T, C), out_dtype),
        grid_spec=pltpu.PrefetchScalarGridSpec(
            num_scalar_prefetch=0,
            grid=(B,),
            in_specs=[
                pl.BlockSpec((1, T, C), lambda b: (b, 0, 0)),        # x
                pl.BlockSpec((C, 3 * C), lambda b: (0, 0)),          # W_qkv (resident)
                pl.BlockSpec((C, C), lambda b: (0, 0)),              # W_proj (resident)
                pl.BlockSpec((1, C), lambda b: (0, 0)),              # b_proj (resident)
            ],
            out_specs=pl.BlockSpec((1, T, C), lambda b: (b, 0, 0)),
        ),
        compiler_params=pltpu.CompilerParams(
            dimension_semantics=("parallel",),
            vmem_limit_bytes=32 * 1024 * 1024,
        ),
    )(x_bf, wqkv_bf, wp_bf, bp2)


def _reference(x, wq, wk, wv, wp, bp):
    """Pure-JAX f32 reference mirroring the PyTorch forward exactly."""
    B, T, C = x.shape
    q = jnp.einsum('btc,hcs->bhts', x, wq)
    k = jnp.einsum('btc,hcs->bhts', x, wk)
    v = jnp.einsum('btc,hcs->bhts', x, wv)
    wei = jnp.einsum('bhts,bhus->bhtu', q, k) * (C ** -0.5)
    mask = jnp.tril(jnp.ones((T, T), dtype=bool))
    wei = jnp.where(mask, wei, -jnp.inf)
    wei = jax.nn.softmax(wei, axis=-1)
    o = jnp.einsum('bhtu,bhus->bhts', wei, v)
    cat = o.transpose(0, 2, 1, 3).reshape(B, T, C)
    return cat @ wp + bp


if __name__ == "__main__":
    key = jax.random.PRNGKey(0)
    kx, kq, kk, kv, kw, kb = jax.random.split(key, 6)

    # Deterministic synthetic parameters (Linear weights, no checkpoint load).
    wq = 0.02 * jax.random.normal(kq, (NUM_HEADS, N_EMBD, HEAD_SIZE), dtype=jnp.float32)
    wk = 0.02 * jax.random.normal(kk, (NUM_HEADS, N_EMBD, HEAD_SIZE), dtype=jnp.float32)
    wv = 0.02 * jax.random.normal(kv, (NUM_HEADS, N_EMBD, HEAD_SIZE), dtype=jnp.float32)
    wp = 0.02 * jax.random.normal(kw, (N_EMBD, N_EMBD), dtype=jnp.float32)
    bp = 0.02 * jax.random.normal(kb, (N_EMBD,), dtype=jnp.float32)

    # Small shape (B=2, T=8) plus the module's full context (T=256) to exercise
    # the 128-row query tiling + causal K-trimming path.  Tolerance is relaxed
    # vs. the f32 reference because the kernel uses bf16 MXU operands.
    for (B, T) in [(2, 8), (2, BLOCK_SIZE)]:
        x = jax.random.normal(kx, (B, T, N_EMBD), dtype=jnp.float32)
        out = multi_head_attention(x, wq, wk, wv, wp, bp)
        out = jax.block_until_ready(out)
        ref = _reference(x, wq, wk, wv, wp, bp)
        assert out.shape == (B, T, N_EMBD)
        assert jnp.allclose(out, ref, atol=2e-2, rtol=2e-2), \
            f"mismatch vs JAX reference at T={T}"

    print("KERNEL_OK")
</pallas_src>

<mosaic_0001>
module attributes {stable_mosaic.version = 11 : i64} {
  func.func @_mha_fused_kernel(%arg0: i32, %arg1: memref<1x8x384xbf16, #tpu.memory_space<vmem>>, %arg2: memref<384x1152xbf16, #tpu.memory_space<vmem>>, %arg3: memref<384x384xbf16, #tpu.memory_space<vmem>>, %arg4: memref<1x384xf32, #tpu.memory_space<vmem>>, %arg5: memref<1x8x384xf32, #tpu.memory_space<vmem>>) attributes {dimension_semantics = [#tpu.dimension_semantics<parallel>], iteration_bounds = array<i64: 2>, scalar_prefetch = 0 : i64, scratch_operands = 0 : i64, tpu.core_type = #tpu.core_type<tc>, window_params = [{transform_indices = @transform_0, window_bounds = array<i64: 1, 8, 384>}, {pipeline_mode = #tpu.pipeline_mode<synchronous>, transform_indices = @transform_1, window_bounds = array<i64: 384, 1152>}, {pipeline_mode = #tpu.pipeline_mode<synchronous>, transform_indices = @transform_2, window_bounds = array<i64: 384, 384>}, {pipeline_mode = #tpu.pipeline_mode<synchronous>, transform_indices = @transform_3, window_bounds = array<i64: 1, 384>}, {transform_indices = @transform_4, window_bounds = array<i64: 1, 8, 384>}]} {
    %c0 = arith.constant 0 : index
    %c0_0 = arith.constant 0 : index
    %c0_1 = arith.constant 0 : index
    %0 = vector.load %arg1[%c0, %c0_0, %c0_1] : memref<1x8x384xbf16, #tpu.memory_space<vmem>>, vector<1x8x384xbf16>
    %1 = vector.shape_cast %0 : vector<1x8x384xbf16> to vector<8x384xbf16>
    %c0_2 = arith.constant 0 : index
    %c0_3 = arith.constant 0 : index
    %2 = vector.load %arg2[%c0_2, %c0_3] : memref<384x1152xbf16, #tpu.memory_space<vmem>>, vector<384x1152xbf16>
    %cst = arith.constant dense<0.000000e+00> : vector<8x1152xf32>
    %3 = tpu.matmul %1, %2, %cst {dimension_numbers = #tpu.dot_dimension_numbers<[1], [0], [0], [1], [0, 0, 1, 1], [], []>} : vector<8x384xbf16>, vector<384x1152xbf16>, vector<8x1152xf32> -> vector<8x1152xf32>
    %4 = arith.truncf %3 : vector<8x1152xf32> to vector<8x1152xbf16>
    %5 = tpu.iota {dimensions = array<i32: 0>} : vector<8x8xi32>
    %6 = tpu.iota {dimensions = array<i32: 1>} : vector<8x8xi32>
    %7 = arith.cmpi sle, %6, %5 : vector<8x8xi32>
    %cst_4 = arith.constant 0.000000e+00 : f32
    %cst_5 = arith.constant -1.000000e+30 : f32
    %8 = vector.broadcast %cst_4 : f32 to vector<8x8xf32>
    %9 = vector.broadcast %cst_5 : f32 to vector<8x8xf32>
    %10 = arith.select %7, %8, %9 : vector<8x8xi1>, vector<8x8xf32>
    %11 = vector.extract_strided_slice %4 {offsets = [0, 0], sizes = [8, 64], strides = [1, 1]} : vector<8x1152xbf16> to vector<8x64xbf16>
    %12 = vector.extract_strided_slice %4 {offsets = [0, 384], sizes = [8, 64], strides = [1, 1]} : vector<8x1152xbf16> to vector<8x64xbf16>
    %13 = vector.extract_strided_slice %4 {offsets = [0, 768], sizes = [8, 64], strides = [1, 1]} : vector<8x1152xbf16> to vector<8x64xbf16>
    %cst_6 = arith.constant dense<0.000000e+00> : vector<8x8xf32>
    %14 = tpu.matmul %11, %12, %cst_6 {dimension_numbers = #tpu.dot_dimension_numbers<[1], [1], [0], [0], [0, 0, 1, 0], [], []>} : vector<8x64xbf16>, vector<8x64xbf16>, vector<8x8xf32> -> vector<8x8xf32>
    %15 = arith.addf %14, %10 : vector<8x8xf32>
    %cst_7 = arith.constant dense<0xFF800000> : vector<8xf32>
    %16 = vector.multi_reduction <maximumf>, %15, %cst_7 [1] : vector<8x8xf32> to vector<8xf32>
    %17 = vector.shape_cast %16 : vector<8xf32> to vector<8x1xf32>
    %18 = vector.broadcast %17 : vector<8x1xf32> to vector<8x8xf32>
    %19 = arith.subf %15, %18 : vector<8x8xf32>
    %20 = math.exp %19 : vector<8x8xf32>
    %cst_8 = arith.constant dense<0.000000e+00> : vector<8xf32>
    %21 = vector.multi_reduction <add>, %20, %cst_8 [1] : vector<8x8xf32> to vector<8xf32>
    %22 = vector.shape_cast %21 : vector<8xf32> to vector<8x1xf32>
    %23 = arith.truncf %20 : vector<8x8xf32> to vector<8x8xbf16>
    %cst_9 = arith.constant dense<0.000000e+00> : vector<8x64xf32>
    %24 = tpu.matmul %23, %13, %cst_9 {dimension_numbers = #tpu.dot_dimension_numbers<[1], [0], [0], [1], [0, 0, 1, 1], [], []>} : vector<8x8xbf16>, vector<8x64xbf16>, vector<8x64xf32> -> vector<8x64xf32>
    %25 = tpu.reciprocal %22 {approx = true} : vector<8x1xf32> -> vector<8x1xf32>
    %26 = vector.broadcast %25 : vector<8x1xf32> to vector<8x64xf32>
    %27 = arith.mulf %24, %26 : vector<8x64xf32>
    %28 = arith.truncf %27 : vector<8x64xf32> to vector<8x64xbf16>
    %29 = vector.extract_strided_slice %4 {offsets = [0, 64], sizes = [8, 64], strides = [1, 1]} : vector<8x1152xbf16> to vector<8x64xbf16>
    %30 = vector.extract_strided_slice %4 {offsets = [0, 448], sizes = [8, 64], strides = [1, 1]} : vector<8x1152xbf16> to vector<8x64xbf16>
    %31 = vector.extract_strided_slice %4 {offsets = [0, 832], sizes = [8, 64], strides = [1, 1]} : vector<8x1152xbf16> to vector<8x64xbf16>
    %cst_10 = arith.constant dense<0.000000e+00> : vector<8x8xf32>
    %32 = tpu.matmul %29, %30, %cst_10 {dimension_numbers = #tpu.dot_dimension_numbers<[1], [1], [0], [0], [0, 0, 1, 0], [], []>} : vector<8x64xbf16>, vector<8x64xbf16>, vector<8x8xf32> -> vector<8x8xf32>
    %33 = arith.addf %32, %10 : vector<8x8xf32>
    %cst_11 = arith.constant dense<0xFF800000> : vector<8xf32>
    %34 = vector.multi_reduction <maximumf>, %33, %cst_11 [1] : vector<8x8xf32> to vector<8xf32>
    %35 = vector.shape_cast %34 : vector<8xf32> to vector<8x1xf32>
    %36 = vector.broadcast %35 : vector<8x1xf32> to vector<8x8xf32>
    %37 = arith.subf %33, %36 : vector<8x8xf32>
    %38 = math.exp %37 : vector<8x8xf32>
    %cst_12 = arith.constant dense<0.000000e+00> : vector<8xf32>
    %39 = vector.multi_reduction <add>, %38, %cst_12 [1] : vector<8x8xf32> to vector<8xf32>
    %40 = vector.shape_cast %39 : vector<8xf32> to vector<8x1xf32>
    %41 = arith.truncf %38 : vector<8x8xf32> to vector<8x8xbf16>
    %cst_13 = arith.constant dense<0.000000e+00> : vector<8x64xf32>
    %42 = tpu.matmul %41, %31, %cst_13 {dimension_numbers = #tpu.dot_dimension_numbers<[1], [0], [0], [1], [0, 0, 1, 1], [], []>} : vector<8x8xbf16>, vector<8x64xbf16>, vector<8x64xf32> -> vector<8x64xf32>
    %43 = tpu.reciprocal %40 {approx = true} : vector<8x1xf32> -> vector<8x1xf32>
    %44 = vector.broadcast %43 : vector<8x1xf32> to vector<8x64xf32>
    %45 = arith.mulf %42, %44 : vector<8x64xf32>
    %46 = arith.truncf %45 : vector<8x64xf32> to vector<8x64xbf16>
    %47 = vector.extract_strided_slice %4 {offsets = [0, 128], sizes = [8, 64], strides = [1, 1]} : vector<8x1152xbf16> to vector<8x64xbf16>
    %48 = vector.extract_strided_slice %4 {offsets = [0, 512], sizes = [8, 64], strides = [1, 1]} : vector<8x1152xbf16> to vector<8x64xbf16>
    %49 = vector.extract_strided_slice %4 {offsets = [0, 896], sizes = [8, 64], strides = [1, 1]} : vector<8x1152xbf16> to vector<8x64xbf16>
    %cst_14 = arith.constant dense<0.000000e+00> : vector<8x8xf32>
    %50 = tpu.matmul %47, %48, %cst_14 {dimension_numbers = #tpu.dot_dimension_numbers<[1], [1], [0], [0], [0, 0, 1, 0], [], []>} : vector<8x64xbf16>, vector<8x64xbf16>, vector<8x8xf32> -> vector<8x8xf32>
    %51 = arith.addf %50, %10 : vector<8x8xf32>
    %cst_15 = arith.constant dense<0xFF800000> : vector<8xf32>
    %52 = vector.multi_reduction <maximumf>, %51, %cst_15 [1] : vector<8x8xf32> to vector<8xf32>
    %53 = vector.shape_cast %52 : vector<8xf32> to vector<8x1xf32>
    %54 = vector.broadcast %53 : vector<8x1xf32> to vector<8x8xf32>
    %55 = arith.subf %51, %54 : vector<8x8xf32>
    %56 = math.exp %55 : vector<8x8xf32>
    %cst_16 = arith.constant dense<0.000000e+00> : vector<8xf32>
    %57 = vector.multi_reduction <add>, %56, %cst_16 [1] : vector<8x8xf32> to vector<8xf32>
    %58 = vector.shape_cast %57 : vector<8xf32> to vector<8x1xf32>
    %59 = arith.truncf %56 : vector<8x8xf32> to vector<8x8xbf16>
    %cst_17 = arith.constant dense<0.000000e+00> : vector<8x64xf32>
    %60 = tpu.matmul %59, %49, %cst_17 {dimension_numbers = #tpu.dot_dimension_numbers<[1], [0], [0], [1], [0, 0, 1, 1], [], []>} : vector<8x8xbf16>, vector<8x64xbf16>, vector<8x64xf32> -> vector<8x64xf32>
    %61 = tpu.reciprocal %58 {approx = true} : vector<8x1xf32> -> vector<8x1xf32>
    %62 = vector.broadcast %61 : vector<8x1xf32> to vector<8x64xf32>
    %63 = arith.mulf %60, %62 : vector<8x64xf32>
    %64 = arith.truncf %63 : vector<8x64xf32> to vector<8x64xbf16>
    %65 = vector.extract_strided_slice %4 {offsets = [0, 192], sizes = [8, 64], strides = [1, 1]} : vector<8x1152xbf16> to vector<8x64xbf16>
    %66 = vector.extract_strided_slice %4 {offsets = [0, 576], sizes = [8, 64], strides = [1, 1]} : vector<8x1152xbf16> to vector<8x64xbf16>
    %67 = vector.extract_strided_slice %4 {offsets = [0, 960], sizes = [8, 64], strides = [1, 1]} : vector<8x1152xbf16> to vector<8x64xbf16>
    %cst_18 = arith.constant dense<0.000000e+00> : vector<8x8xf32>
    %68 = tpu.matmul %65, %66, %cst_18 {dimension_numbers = #tpu.dot_dimension_numbers<[1], [1], [0], [0], [0, 0, 1, 0], [], []>} : vector<8x64xbf16>, vector<8x64xbf16>, vector<8x8xf32> -> vector<8x8xf32>
    %69 = arith.addf %68, %10 : vector<8x8xf32>
    %cst_19 = arith.constant dense<0xFF800000> : vector<8xf32>
    %70 = vector.multi_reduction <maximumf>, %69, %cst_19 [1] : vector<8x8xf32> to vector<8xf32>
    %71 = vector.shape_cast %70 : vector<8xf32> to vector<8x1xf32>
    %72 = vector.broadcast %71 : vector<8x1xf32> to vector<8x8xf32>
    %73 = arith.subf %69, %72 : vector<8x8xf32>
    %74 = math.exp %73 : vector<8x8xf32>
    %cst_20 = arith.constant dense<0.000000e+00> : vector<8xf32>
    %75 = vector.multi_reduction <add>, %74, %cst_20 [1] : vector<8x8xf32> to vector<8xf32>
    %76 = vector.shape_cast %75 : vector<8xf32> to vector<8x1xf32>
    %77 = arith.truncf %74 : vector<8x8xf32> to vector<8x8xbf16>
    %cst_21 = arith.constant dense<0.000000e+00> : vector<8x64xf32>
    %78 = tpu.matmul %77, %67, %cst_21 {dimension_numbers = #tpu.dot_dimension_numbers<[1], [0], [0], [1], [0, 0, 1, 1], [], []>} : vector<8x8xbf16>, vector<8x64xbf16>, vector<8x64xf32> -> vector<8x64xf32>
    %79 = tpu.reciprocal %76 {approx = true} : vector<8x1xf32> -> vector<8x1xf32>
    %80 = vector.broadcast %79 : vector<8x1xf32> to vector<8x64xf32>
    %81 = arith.mulf %78, %80 : vector<8x64xf32>
    %82 = arith.truncf %81 : vector<8x64xf32> to vector<8x64xbf16>
    %83 = vector.extract_strided_slice %4 {offsets = [0, 256], sizes = [8, 64], strides = [1, 1]} : vector<8x1152xbf16> to vector<8x64xbf16>
    %84 = vector.extract_strided_slice %4 {offsets = [0, 640], sizes = [8, 64], strides = [1, 1]} : vector<8x1152xbf16> to vector<8x64xbf16>
    %85 = vector.extract_strided_slice %4 {offsets = [0, 1024], sizes = [8, 64], strides = [1, 1]} : vector<8x1152xbf16> to vector<8x64xbf16>
    %cst_22 = arith.constant dense<0.000000e+00> : vector<8x8xf32>
    %86 = tpu.matmul %83, %84, %cst_22 {dimension_numbers = #tpu.dot_dimension_numbers<[1], [1], [0], [0], [0, 0, 1, 0], [], []>} : vector<8x64xbf16>, vector<8x64xbf16>, vector<8x8xf32> -> vector<8x8xf32>
    %87 = arith.addf %86, %10 : vector<8x8xf32>
    %cst_23 = arith.constant dense<0xFF800000> : vector<8xf32>
    %88 = vector.multi_reduction <maximumf>, %87, %cst_23 [1] : vector<8x8xf32> to vector<8xf32>
    %89 = vector.shape_cast %88 : vector<8xf32> to vector<8x1xf32>
    %90 = vector.broadcast %89 : vector<8x1xf32> to vector<8x8xf32>
    %91 = arith.subf %87, %90 : vector<8x8xf32>
    %92 = math.exp %91 : vector<8x8xf32>
    %cst_24 = arith.constant dense<0.000000e+00> : vector<8xf32>
    %93 = vector.multi_reduction <add>, %92, %cst_24 [1] : vector<8x8xf32> to vector<8xf32>
    %94 = vector.shape_cast %93 : vector<8xf32> to vector<8x1xf32>
    %95 = arith.truncf %92 : vector<8x8xf32> to vector<8x8xbf16>
    %cst_25 = arith.constant dense<0.000000e+00> : vector<8x64xf32>
    %96 = tpu.matmul %95, %85, %cst_25 {dimension_numbers = #tpu.dot_dimension_numbers<[1], [0], [0], [1], [0, 0, 1, 1], [], []>} : vector<8x8xbf16>, vector<8x64xbf16>, vector<8x64xf32> -> vector<8x64xf32>
    %97 = tpu.reciprocal %94 {approx = true} : vector<8x1xf32> -> vector<8x1xf32>
    %98 = vector.broadcast %97 : vector<8x1xf32> to vector<8x64xf32>
    %99 = arith.mulf %96, %98 : vector<8x64xf32>
    %100 = arith.truncf %99 : vector<8x64xf32> to vector<8x64xbf16>
    %101 = vector.extract_strided_slice %4 {offsets = [0, 320], sizes = [8, 64], strides = [1, 1]} : vector<8x1152xbf16> to vector<8x64xbf16>
    %102 = vector.extract_strided_slice %4 {offsets = [0, 704], sizes = [8, 64], strides = [1, 1]} : vector<8x1152xbf16> to vector<8x64xbf16>
    %103 = vector.extract_strided_slice %4 {offsets = [0, 1088], sizes = [8, 64], strides = [1, 1]} : vector<8x1152xbf16> to vector<8x64xbf16>
    %cst_26 = arith.constant dense<0.000000e+00> : vector<8x8xf32>
    %104 = tpu.matmul %101, %102, %cst_26 {dimension_numbers = #tpu.dot_dimension_numbers<[1], [1], [0], [0], [0, 0, 1, 0], [], []>} : vector<8x64xbf16>, vector<8x64xbf16>, vector<8x8xf32> -> vector<8x8xf32>
    %105 = arith.addf %104, %10 : vector<8x8xf32>
    %cst_27 = arith.constant dense<0xFF800000> : vector<8xf32>
    %106 = vector.multi_reduction <maximumf>, %105, %cst_27 [1] : vector<8x8xf32> to vector<8xf32>
    %107 = vector.shape_cast %106 : vector<8xf32> to vector<8x1xf32>
    %108 = vector.broadcast %107 : vector<8x1xf32> to vector<8x8xf32>
    %109 = arith.subf %105, %108 : vector<8x8xf32>
    %110 = math.exp %109 : vector<8x8xf32>
    %cst_28 = arith.constant dense<0.000000e+00> : vector<8xf32>
    %111 = vector.multi_reduction <add>, %110, %cst_28 [1] : vector<8x8xf32> to vector<8xf32>
    %112 = vector.shape_cast %111 : vector<8xf32> to vector<8x1xf32>
    %113 = arith.truncf %110 : vector<8x8xf32> to vector<8x8xbf16>
    %cst_29 = arith.constant dense<0.000000e+00> : vector<8x64xf32>
    %114 = tpu.matmul %113, %103, %cst_29 {dimension_numbers = #tpu.dot_dimension_numbers<[1], [0], [0], [1], [0, 0, 1, 1], [], []>} : vector<8x8xbf16>, vector<8x64xbf16>, vector<8x64xf32> -> vector<8x64xf32>
    %115 = tpu.reciprocal %112 {approx = true} : vector<8x1xf32> -> vector<8x1xf32>
    %116 = vector.broadcast %115 : vector<8x1xf32> to vector<8x64xf32>
    %117 = arith.mulf %114, %116 : vector<8x64xf32>
    %118 = arith.truncf %117 : vector<8x64xf32> to vector<8x64xbf16>
    %119 = tpu.concatenate %28, %46, %64, %82, %100, %118 in 1 : vector<8x64xbf16>, vector<8x64xbf16>, vector<8x64xbf16>, vector<8x64xbf16>, vector<8x64xbf16>, vector<8x64xbf16> -> vector<8x384xbf16>
    %c0_30 = arith.constant 0 : index
    %c0_31 = arith.constant 0 : index
    %120 = vector.load %arg3[%c0_30, %c0_31] : memref<384x384xbf16, #tpu.memory_space<vmem>>, vector<384x384xbf16>
    %cst_32 = arith.constant dense<0.000000e+00> : vector<8x384xf32>
    %121 = tpu.matmul %119, %120, %cst_32 {dimension_numbers = #tpu.dot_dimension_numbers<[1], [0], [0], [1], [0, 0, 1, 1], [], []>} : vector<8x384xbf16>, vector<384x384xbf16>, vector<8x384xf32> -> vector<8x384xf32>
    %c0_33 = arith.constant 0 : index
    %c0_34 = arith.constant 0 : index
    %122 = vector.load %arg4[%c0_33, %c0_34] : memref<1x384xf32, #tpu.memory_space<vmem>>, vector<1x384xf32>
    %123 = vector.broadcast %122 : vector<1x384xf32> to vector<8x384xf32>
    %124 = arith.addf %121, %123 : vector<8x384xf32>
    %c0_35 = arith.constant 0 : index
    %c0_36 = arith.constant 0 : index
    %c0_37 = arith.constant 0 : index
    %125 = vector.load %arg5[%c0_35, %c0_36, %c0_37] : memref<1x8x384xf32, #tpu.memory_space<vmem>>, vector<1x8x384xf32>
    %126 = vector.shape_cast %125 : vector<1x8x384xf32> to vector<8x384xf32>
    %127 = vector.shape_cast %124 : vector<8x384xf32> to vector<1x8x384xf32>
    tpu.vector_store %arg5[%c0_35, %c0_36, %c0_37], %127 {strides = array<i32>} : memref<1x8x384xf32, #tpu.memory_space<vmem>>, vector<1x8x384xf32>,
    return
  }
  func.func @transform_0(%arg0: i32) -> (i32, i32, i32) {
    %c0_i32 = arith.constant 0 : i32
    %c0_i32_0 = arith.constant 0 : i32
    %c0_i32_1 = arith.constant 0 : i32
    return %arg0, %c0_i32, %c0_i32_0 : i32, i32, i32
  }
  func.func @transform_1(%arg0: i32) -> (i32, i32) {
    %c0_i32 = arith.constant 0 : i32
    %c0_i32_0 = arith.constant 0 : i32
    %c0_i32_1 = arith.constant 0 : i32
    return %c0_i32, %c0_i32_0 : i32, i32
  }
  func.func @transform_2(%arg0: i32) -> (i32, i32) {
    %c0_i32 = arith.constant 0 : i32
    %c0_i32_0 = arith.constant 0 : i32
    %c0_i32_1 = arith.constant 0 : i32
    return %c0_i32, %c0_i32_0 : i32, i32
  }
  func.func @transform_3(%arg0: i32) -> (i32, i32) {
    %c0_i32 = arith.constant 0 : i32
    %c0_i32_0 = arith.constant 0 : i32
    %c0_i32_1 = arith.constant 0 : i32
    return %c0_i32, %c0_i32_0 : i32, i32
  }
  func.func @transform_4(%arg0: i32) -> (i32, i32, i32) {
    %c0_i32 = arith.constant 0 : i32
    %c0_i32_0 = arith.constant 0 : i32
    %c0_i32_1 = arith.constant 0 : i32
    return %arg0, %c0_i32, %c0_i32_0 : i32, i32, i32
  }
}

</mosaic_0001>

<bundles_post_ra>
// kernel: tpu_custom_call.1
= control target key start
LH: loop header
LB: loop body
LE: loop exit
PB: predicated region body
PF: predicated region fallthrough
CT: control target
= control target key end

     0   :  { %9 = vsyncpa [#allocation3], 0  ;;  %s5138_s0 = inlined_call_operand.hbm [shape: bf16[2,8,384], index: 0, kind: input, shape index: {}]   ;;  %s5139_s1 = inlined_call_operand.hbm [shape: bf16[384,1152], index: 1, kind: input, shape index: {}]   ;;  %s5140_s2 = inlined_call_operand.hbm [shape: bf16[384,384], index: 2, kind: input, shape index: {}]   ;;  %s5141_s3 = inlined_call_operand.vmem [shape: f32[1,384], index: 3, kind: input, shape index: {}]   ;;  %s5142_s4 = inlined_call_operand.hbm [shape: f32[2,8,384], index: 4, kind: output, shape index: {}]  }
   0x1   :  { %11 = vsyncpa [#allocation3 + $0x1], 0 }
   0x2   :  { %12 = vsyncpa [#allocation6], 0 }
   0x3   :  { %13 = vsyncpa [#allocation4], 0 }
   0x4   :  { %15 = vsyncpa [#allocation4 + $0x1], 0  ;;  %s4718_s15 = smov 0   ;;  %s4720_s16 = smov 0  }
   0x5   :  { %s4722_s17 = smov 0   ;;  %s4724_s18 = smov 0  }
   0x6 LB: > { %s4739_s19 = sadd.s32 4294967295, %s4678_s18   ;;  %s3471_s20 = sadd.s32 4294967294, %s4678_s18   ;;  %s4678_s18 = sphi %s4724_s18, %s5162_s18   ;;  %s4674_s17 = sphi %s4722_s17, %s5161_s17   ;;  %s4670_s16 = sphi %s4720_s16, %s5160_s16   ;;  %s4666_s15 = sphi %s4718_s15, %s5159_s15  }
   0x7   : > { %p41_p0 = scmp.ne.s32.totalorder %s4670_s16, %s4666_s15  ;;  %p5143_p1 = scmp.eq.s32.totalorder %s4739_s19, 0 }
   0x8   : > { %p134_p3 = scmp.eq.s32.totalorder %s3471_s20, 1  ;;  %p3472_p5 = scmp.ge.s32.totalorder %s4678_s18, 1 }
   0x9   : > { %p4748_p4 = por %p5143_p1, %p41_p0  ;;  %p141_p7 = scmp.lt.s32.totalorder %s4678_s18, 3 }
   0xa   : > { %p4753_p6 = por %p134_p3, %p41_p0  ;;  %s4680_s24 = smov [#allocation5]  }
   0xb   : > { %s5146_s21 = scalar_select %p4748_p4, 1, 0 }
   0xc   : > { %s5147_s22 = scalar_select %p4753_p6, 1, 0 }
   0xd   : > { %p4758_p8 = pnand %p3472_p5, %p141_p7  ;;  %s153_s25 = sshll.u32 %s4680_s24, 4  ;;  %s4762_s25 = int_to_ptr.vmem [resolvable:$true] %s153_s25 }
   0xe   : > { %s4681_s27 = smov [#allocation7]   ;;  %s4522_s5 = scalar_lea.hbm %s5139_s1, 27648 }
   0xf   : > { %p4023_p9 = pneg %p4758_p8  ;;  %s166_s28 = sshll.u32 %s4681_s27, 4  ;;  %s4773_s28 = int_to_ptr.vmem [resolvable:$true] %s166_s28 }
  0x10   : > { %p4523_p12 = scmp.ne.s32.totalorder %s5139_s1, %s4522_s5  ;;  %p4529_p5 = scmp.lt.u32.totalorder %s4522_s5, %s5139_s1 }
  0x11   : > { %p4769_p11 = pnand %p4023_p9, %p5143_p1 }
  0x13   : > { %p4524_p13 = pneg %p4769_p11 }
  0x15   : > { %p4525_p0 = pnand %p4524_p13, %p4523_p12 }
  0x17   : > { %p4526_p3 = pneg %p4525_p0 }
  0x19   : > { %p4531_p7 = pnand %p4529_p5, %p4526_p3 }
  0x1b   : > { %4534 = shalt.err (!%p4531_p7)
}
  0x1c   : > { %s4535_s10 = scalar_lea.vmem %s4762_s25, 27648  ;;  %p4543_p2 = scmp.lt.s32.totalorder %s4762_s25, %s4762_s25 }
  0x1d   : > { %p4536_p9 = scmp.ne.s32.totalorder %s4762_s25, %s4535_s10  ;;  %p4544_p12 = scmp.lt.s32.totalorder %s4535_s10, %s4535_s10 }
  0x1f   : > { %p4538_p10 = pnand %p4536_p9, %p4524_p13  ;;  %p4545_p0 = por %p4544_p12, %p4543_p2 }
  0x21   : > { %p4539_p1 = pneg %p4538_p10 }
  0x23   : > { %p4546_p6 = pnand %p4545_p0, %p4539_p1 }
  0x25   : > { %4549 = shalt.err (!%p4546_p6)
}
  0x26   : > { %s4682_s11 = smov 576   ;;  %s4683_s12 = smov 36  }
  0x27   : > { %4026 = dma.hbm_to_vmem [thread:$0]  (!%p4769_p11), %s5139_s1, 27648, %s4762_s25, [#allocation6], %s4682_s11, %s4682_s11, %s4683_s12  }
  0x28   : > { %s4550_s27 = scalar_lea.hbm %s5140_s2, 9216 }
  0x29   : > { %p4551_p2 = scmp.ne.s32.totalorder %s5140_s2, %s4550_s27  ;;  %p4557_p10 = scmp.lt.u32.totalorder %s4550_s27, %s5140_s2 }
  0x2b   : > { %p4553_p1 = pnand %p4551_p2, %p4524_p13 }
  0x2d   : > { %p4554_p6 = pneg %p4553_p1 }
  0x2f   : > { %p4559_p3 = pnand %p4557_p10, %p4554_p6 }
  0x31   : > { %4562 = shalt.err (!%p4559_p3)
}
  0x32   : > { %s4563_s25 = scalar_lea.vmem %s4773_s28, 9216  ;;  %p4571_p12 = scmp.lt.s32.totalorder %s4773_s28, %s4773_s28 }
  0x33   : > { %p4564_p5 = scmp.ne.s32.totalorder %s4773_s28, %s4563_s25  ;;  %p4572_p0 = scmp.lt.s32.totalorder %s4563_s25, %s4563_s25 }
  0x35   : > { %p4566_p7 = pnand %p4564_p5, %p4524_p13  ;;  %p4573_p2 = por %p4572_p0, %p4571_p12 }
  0x37   : > { %p4567_p9 = pneg %p4566_p7 }
  0x39   : > { %p4574_p1 = pnand %p4573_p2, %p4567_p9 }
  0x3b   : > { %4577 = shalt.err (!%p4574_p1)
}
  0x3c   : > { %s4684_s7 = smov 192   ;;  %s4685_s8 = smov 12  }
  0x3d   : > { %4029 = dma.hbm_to_vmem [thread:$0]  (!%p4769_p11), %s5140_s2, 9216, %s4773_s28, [#allocation6], %s4684_s7, %s4684_s7, %s4685_s8  }
  0x3e   : > { %s4828_s11 = sadd.s32 1, %s4678_s18   ;;  %s28_s13 = sadd.s32 1, %s4674_s17 }
  0x3f   : > { %s25_s12 = ssub.s32 %s4678_s18, %s4828_s11  ;;  %p35_p6 = scmp.ne.s32.totalorder %s4674_s17, %s4670_s16 }
  0x40   : > { %p26_p13 = scmp.eq.s32.totalorder %s25_s12, 0  ;;  %p36_p10 = scmp.eq.s32.totalorder %s4678_s18, 0 }
  0x41   : > { %p5150_p5 = scmp.eq.s32.totalorder %s4739_s19, 1  ;;  %p4040_p9 = scmp.lt.s32.totalorder %s4678_s18, 2 }
  0x42   : > { %s4837_s14 = scalar_select %p26_p13, %s4674_s17, %s28_s13  }
  0x43   : > { %p37_p3 = por %p36_p10, %p35_p6  ;;  %p4841_p7 = por %p5150_p5, %p35_p6 }
  0x44   : > { %s183_s26 = sand.u32 1, %s4674_s17   ;;  %s4007_s28 = smul.u32 192, %s4678_s18 }
  0x45   : > { %s5151_s20 = scalar_select %p4841_p7, 1, 0 }
  0x46   : > { %s4006_s24 = smul.u32 12, %s183_s26  ;;  %p4848_p11 = pnand %p4040_p9, %p37_p3 }
  0x47   : > { %s4855_s5 = scalar_lea.hbm %s5138_s0, %s4007_s28  ;;  %s184_s7 = scalar_lea.sflag [#allocation3], %s183_s26 }
  0x48   : > { %s187_s6 = scalar_lea.vmem [#allocation2], %s4006_s24  ;;  %s4578_s8 = scalar_lea.hbm %s4855_s5, 192 }
  0x49   : > { %s195_s25 = sshll.u32 %s187_s6, 4  ;;  %p4579_p12 = scmp.ne.s32.totalorder %s4855_s5, %s4578_s8  ;;  %s4857_s25 = int_to_ptr.vmem [resolvable:$true] %s195_s25 }
  0x4a   : > { %p4580_p0 = pneg %p4848_p11  ;;  %s4583_s12 = scalar_lea.hbm %s5138_s0, 384 }
  0x4b   : > { %p4584_p13 = scmp.lt.u32.totalorder %s4855_s5, %s5138_s0  ;;  %p4585_p6 = scmp.lt.u32.totalorder %s4583_s12, %s4578_s8 }
  0x4c   : > { %p4581_p2 = pnand %p4580_p0, %p4579_p12  ;;  %p4587_p3 = scmp.lt.u32.totalorder %s4578_s8, %s4855_s5 }
  0x4d   : > { %p4586_p10 = por %p4585_p6, %p4584_p13 }
  0x4e   : > { %p4582_p1 = pneg %p4581_p2 }
  0x4f   : > { %p4588_p5 = por %p4587_p3, %p4586_p10 }
  0x51   : > { %p4589_p9 = pnand %p4588_p5, %p4582_p1 }
  0x53   : > { %4592 = shalt.err (!%p4589_p9)
}
  0x54   : > { %s4593_s26 = scalar_lea.vmem %s4857_s25, 192  ;;  %s4686_s24 = smov [#allocation2]  }
  0x55   : > { %p4594_p12 = scmp.ne.s32.totalorder %s4857_s25, %s4593_s26  ;;  %s4598_s29 = sshll.u32 %s4686_s24, 4  ;;  %s4599_s29 = int_to_ptr.vmem [resolvable:$false] %s4598_s29 }
  0x56   : > { %s4600_s30 = scalar_lea.vmem %s4599_s29, 384  ;;  %p4601_p4 = scmp.lt.s32.totalorder %s4857_s25, %s4599_s29 }
  0x57   : > { %p4596_p2 = pnand %p4594_p12, %p4580_p0  ;;  %p4602_p13 = scmp.lt.s32.totalorder %s4600_s30, %s4593_s26 }
  0x59   : > { %p4597_p7 = pneg %p4596_p2  ;;  %p4603_p6 = por %p4602_p13, %p4601_p4 }
  0x5b   : > { %p4604_p10 = pnand %p4603_p6, %p4597_p7 }
  0x5d   : > { %4607 = shalt.err (!%p4604_p10)
}
  0x5e   : > { %4033 = dma.hbm_to_vmem [thread:$0]  (!%p4848_p11), %s4855_s5, 192, %s4857_s25, %s184_s7  }
  0x5f   : > { %204 = sbr.rel (%p4758_p8) target bundleno = 1821 (0x71d), region = 36  ;;  %s4887_s6 = sand.u32 (!%p4758_p8), 1, %s4670_s16  }
  0x60   : > { %s4008_s8 = smul.u32 (!%p4758_p8), 12, %s4887_s6  ;;  %s207_s9 = scalar_lea.sflag (!%p4758_p8), [#allocation3], %s4887_s6 }
  0x61   : > { %p5153_p4 = scmp.ne.s32.totalorder (!%p4758_p8), %s5146_s21, 0 }
  0x62   : > { %s4891_s10 = scalar_lea.vmem (!%p4758_p8), [#allocation2], %s4008_s8 }
  0x66   : > { %4653 = dma.done.wait (%p5153_p4), %s207_s9, 192  }
  0x67   : > { %4655 = vsyncadd (%p5153_p4), %s207_s9, 4294967104  ;;  %p5154_p7 = scmp.eq.s32.totalorder %s4739_s19, 0 }
  0x69   : > { %4657 = dma.done.wait (%p5154_p7), [#allocation6], 36864   ;;  %p5155_p8 = pmov %p5154_p7 }
  0x6a   : > { %v4087_v0 = vld [vmem:[#allocation5 + $0x4] ss:$36 sps:$4 sm:$0xff]   ;;  %v4089_v1 = vld [vmem:[#allocation5 + $0xc] ss:$36 sps:$4 sm:$0xff]   ;;  %v4095_v5 = vld [vmem:[#allocation5 + $0x54] ss:$36 sps:$4 sm:$0xff]  }
  0x6b   : > { %4659 = vsyncadd (%p5155_p8), [#allocation6], 4294930432  ;;  %1601 = vmatprep.subr.bf16.mxu0 %v4087_v0  ;;  %v4091_v2 = vld [vmem:[#allocation5] ss:$36 sps:$4 sm:$0xff]   ;;  %v4092_v3 = vld [vmem:[#allocation5 + $0x8] ss:$36 sps:$4 sm:$0xff]   ;;  %1683 = vmatprep.subr.bf16.mxu1 %v4089_v1 }
  0x6c   : > { %v4093_v4 = vld [vmem:[#allocation5 + $0x4c] ss:$36 sps:$4 sm:$0xff]   ;;  %1602 = vmatpush1.bf16.msra.mxu0 %v4091_v2  ;;  %1684 = vmatpush1.bf16.msra.mxu1 %v4092_v3  ;;  %v4099_v8 = vld [vmem:[#allocation5 + $0x94] ss:$36 sps:$4 sm:$0xff]   ;;  %v4101_v9 = vld [vmem:[#allocation5 + $0x9c] ss:$36 sps:$4 sm:$0xff]  }
  0x6d   : > { %v4097_v6 = vld [vmem:[#allocation5 + $0x48] ss:$36 sps:$4 sm:$0xff]   ;;  %1603 = vmatprep.subr.bf16.mxu0 %v4093_v4  ;;  %v4098_v7 = vld [vmem:[#allocation5 + $0x50] ss:$36 sps:$4 sm:$0xff]   ;;  %1685 = vmatprep.subr.bf16.mxu1 %v4095_v5  ;;  %v4104_v11 = vld [vmem:[#allocation5 + $0x98] ss:$36 sps:$4 sm:$0xff]  }
  0x6e   : > { %v4103_v10 = vld [vmem:[#allocation5 + $0x90] ss:$36 sps:$4 sm:$0xff]   ;;  %v4105_v12 = vld [vmem:[#allocation5 + $0xdc] ss:$36 sps:$4 sm:$0xff]   ;;  %v4107_v13 = vld [vmem:[#allocation5 + $0xe4] ss:$36 sps:$4 sm:$0xff]  }
  0x6f   : > { %v4109_v14 = vld [vmem:[#allocation5 + $0xd8] ss:$36 sps:$4 sm:$0xff]   ;;  %v4110_v15 = vld [vmem:[#allocation5 + $0xe0] ss:$36 sps:$4 sm:$0xff]   ;;  %v4113_v17 = vld [vmem:[#allocation5 + $0x12c] ss:$36 sps:$4 sm:$0xff]  }
  0x70   : > { %1604 = vmatpush1.bf16.msra.mxu0 %v4097_v6  ;;  %1686 = vmatpush1.bf16.msra.mxu1 %v4098_v7  ;;  %v4111_v16 = vld [vmem:[#allocation5 + $0x124] ss:$36 sps:$4 sm:$0xff]   ;;  %v4117_v20 = vld [vmem:[#allocation5 + $0x16c] ss:$36 sps:$4 sm:$0xff]   ;;  %v4119_v21 = vld [vmem:[#allocation5 + $0x174] ss:$36 sps:$4 sm:$0xff]  }
  0x71   : > { %1605 = vmatprep.subr.bf16.mxu0 %v4099_v8  ;;  %1687 = vmatprep.subr.bf16.mxu1 %v4101_v9  ;;  %v4115_v18 = vld [vmem:[#allocation5 + $0x120] ss:$36 sps:$4 sm:$0xff]   ;;  %v4116_v19 = vld [vmem:[#allocation5 + $0x128] ss:$36 sps:$4 sm:$0xff]   ;;  %v4122_v23 = vld [vmem:[#allocation5 + $0x170] ss:$36 sps:$4 sm:$0xff]  }
  0x72   : > { %v4121_v22 = vld [vmem:[#allocation5 + $0x168] ss:$36 sps:$4 sm:$0xff]   ;;  %v4123_v24 = vld [vmem:[#allocation5 + $0x1b4] ss:$36 sps:$4 sm:$0xff]   ;;  %v4125_v25 = vld [vmem:[#allocation5 + $0x1bc] ss:$36 sps:$4 sm:$0xff]  }
  0x73   : > { %v4127_v26 = vld [vmem:[#allocation5 + $0x1b0] ss:$36 sps:$4 sm:$0xff]   ;;  %v4128_v27 = vld [vmem:[#allocation5 + $0x1b8] ss:$36 sps:$4 sm:$0xff]   ;;  %v4131_v29 = vld [vmem:[#allocation5 + $0x204] ss:$36 sps:$4 sm:$0xff]  }
  0x74   : > { %1606 = vmatpush1.bf16.msra.mxu0 %v4103_v10  ;;  %1688 = vmatpush1.bf16.msra.mxu1 %v4104_v11  ;;  %v4129_v28 = vld [vmem:[#allocation5 + $0x1fc] ss:$36 sps:$4 sm:$0xff]   ;;  %v4135_v32 = vld [vmem:[#allocation5 + $0x244] ss:$36 sps:$4 sm:$0xff]   ;;  %v4137_v33 = vld [vmem:[#allocation5 + $0x24c] ss:$36 sps:$4 sm:$0xff]  }
  0x75   : > { %1607 = vmatprep.subr.bf16.mxu0 %v4105_v12  ;;  %1689 = vmatprep.subr.bf16.mxu1 %v4107_v13  ;;  %v4133_v30 = vld [vmem:[#allocation5 + $0x1f8] ss:$36 sps:$4 sm:$0xff]   ;;  %v4134_v31 = vld [vmem:[#allocation5 + $0x200] ss:$36 sps:$4 sm:$0xff]   ;;  %v4140_v35 = vld [vmem:[#allocation5 + $0x248] ss:$36 sps:$4 sm:$0xff]  }
  0x76   : > { %v4139_v34 = vld [vmem:[#allocation5 + $0x240] ss:$36 sps:$4 sm:$0xff]   ;;  %v4141_v36 = vld [vmem:[#allocation5 + $0x28c] ss:$36 sps:$4 sm:$0xff]   ;;  %v4143_v37 = vld [vmem:[#allocation5 + $0x294] ss:$36 sps:$4 sm:$0xff]  }
  0x77   : > { %v4145_v38 = vld [vmem:[#allocation5 + $0x288] ss:$36 sps:$4 sm:$0xff]   ;;  %v4146_v39 = vld [vmem:[#allocation5 + $0x290] ss:$36 sps:$4 sm:$0xff]   ;;  %v4149_v41 = vld [vmem:[#allocation5 + $0x2dc] ss:$36 sps:$4 sm:$0xff]  }
  0x78   : > { %1608 = vmatpush1.bf16.msra.mxu0 %v4109_v14  ;;  %1690 = vmatpush1.bf16.msra.mxu1 %v4110_v15  ;;  %v4147_v40 = vld [vmem:[#allocation5 + $0x2d4] ss:$36 sps:$4 sm:$0xff]   ;;  %v4153_v44 = vld [vmem:[#allocation5 + $0x31c] ss:$36 sps:$4 sm:$0xff]   ;;  %v4155_v45 = vld [vmem:[#allocation5 + $0x324] ss:$36 sps:$4 sm:$0xff]  }
  0x79   : > { %1609 = vmatprep.subr.bf16.mxu0 %v4111_v16  ;;  %1691 = vmatprep.subr.bf16.mxu1 %v4113_v17  ;;  %v4151_v42 = vld [vmem:[#allocation5 + $0x2d0] ss:$36 sps:$4 sm:$0xff]   ;;  %v4152_v43 = vld [vmem:[#allocation5 + $0x2d8] ss:$36 sps:$4 sm:$0xff]   ;;  %v4158_v49 = vld [vmem:[#allocation5 + $0x320] ss:$36 sps:$4 sm:$0xff]  }
  0x7a   : > { %v244_v46 = vld [vmem:[%s4891_s10] sm:$0xff]  ;;  %v4163_v52 = vld [vmem:[#allocation5 + $0x360] ss:$36 sps:$4 sm:$0xff]   ;;  %v4687_v13 = vmov 0   ;;  %vm4689_vm0 = vmmov 0   ;;  %vm2024_vm1 = vcmask 523264  }
  0x7b   : > { %v4157_v47 = vld [vmem:[#allocation5 + $0x318] ss:$36 sps:$4 sm:$0xff]   ;;  %v4902_v48 = vcombine.high %v244_v46, %v244_v46  ;;  %v4159_v50 = vld [vmem:[#allocation5 + $0x364] ss:$36 sps:$4 sm:$0xff]   ;;  %v4161_v51 = vld [vmem:[#allocation5 + $0x36c] ss:$36 sps:$4 sm:$0xff]   ;;  %v4906_v5 = vcombine.low %v244_v46, %v244_v46 }
  0x7c   : > { %1610 = vmatpush1.bf16.msra.mxu0 %v4115_v18  ;;  %1692 = vmatpush1.bf16.msra.mxu1 %v4116_v19  ;;  %v4164_v53 = vld [vmem:[#allocation5 + $0x368] ss:$36 sps:$4 sm:$0xff]   ;;  %v4167_v55 = vld [vmem:[#allocation5 + $0x3b4] ss:$36 sps:$4 sm:$0xff]   ;;  %v4173_v59 = vld [vmem:[#allocation5 + $0x3fc] ss:$36 sps:$4 sm:$0xff]  }
  0x7d   : > { %1611 = vmatprep.subr.bf16.mxu0 %v4117_v20  ;;  %1693 = vmatprep.subr.bf16.mxu1 %v4119_v21  ;;  %v4165_v54 = vld [vmem:[#allocation5 + $0x3ac] ss:$36 sps:$4 sm:$0xff]   ;;  %v4171_v58 = vld [vmem:[#allocation5 + $0x3f4] ss:$36 sps:$4 sm:$0xff]   ;;  %v4177_v62 = vld [vmem:[#allocation5 + $0x43c] ss:$36 sps:$4 sm:$0xff]  }
  0x7e   : > { %1633 = vmatprep.mubr.bf16.mxu0 %v4902_v48  ;;  %1715 = vmatprep.mubr.bf16.mxu1 %v4902_v48  ;;  %v4169_v56 = vld [vmem:[#allocation5 + $0x3a8] ss:$36 sps:$4 sm:$0xff]   ;;  %v4170_v57 = vld [vmem:[#allocation5 + $0x3b0] ss:$36 sps:$4 sm:$0xff]   ;;  %v4176_v61 = vld [vmem:[#allocation5 + $0x3f8] ss:$36 sps:$4 sm:$0xff]  }
  0x7f   : > { %v4175_v60 = vld [vmem:[#allocation5 + $0x3f0] ss:$36 sps:$4 sm:$0xff]   ;;  %v4179_v63 = vld [vmem:[#allocation5 + $0x444] ss:$36 sps:$4 sm:$0xff]   ;;  %v4181_v0 = vld [vmem:[#allocation5 + $0x438] ss:$36 sps:$4 sm:$0xff]  }
  0x80   : > { %1612 = vmatpush1.bf16.msra.mxu0 %v4121_v22  ;;  %1694 = vmatpush1.bf16.msra.mxu1 %v4122_v23  ;;  %v4182_v1 = vld [vmem:[#allocation5 + $0x440] ss:$36 sps:$4 sm:$0xff]   ;;  %v4189_v3 = vld [vmem:[#allocation5 + $0x48c] ss:$36 sps:$4 sm:$0xff]   ;;  %v4196_v8 = vld [vmem:[#allocation5 + $0x4d4] ss:$36 sps:$4 sm:$0xff]  }
  0x81   : > { %1613 = vmatprep.subr.bf16.mxu0 %v4123_v24  ;;  %1695 = vmatprep.subr.bf16.mxu1 %v4125_v25  ;;  %v4186_v2 = vld [vmem:[#allocation5 + $0x484] ss:$36 sps:$4 sm:$0xff]   ;;  %v4193_v7 = vld [vmem:[#allocation5 + $0x4cc] ss:$36 sps:$4 sm:$0xff]   ;;  %v4199_v11 = vld [vmem:[#allocation5 + $0x514] ss:$36 sps:$4 sm:$0xff]  }
  0x82   : > { %v4184_v4 = vld [vmem:[#allocation5 + $0x480] ss:$36 sps:$4 sm:$0xff]   ;;  %v4187_v6 = vld [vmem:[#allocation5 + $0x488] ss:$36 sps:$4 sm:$0xff]   ;;  %v4194_v10 = vld [vmem:[#allocation5 + $0x4d0] ss:$36 sps:$4 sm:$0xff]  }
  0x83   : > { %v4191_v9 = vld [vmem:[#allocation5 + $0x4c8] ss:$36 sps:$4 sm:$0xff]   ;;  %v4202_v12 = vld [vmem:[#allocation5 + $0x51c] ss:$36 sps:$4 sm:$0xff]   ;;  %v4197_v14 = vld [vmem:[#allocation5 + $0x510] ss:$36 sps:$4 sm:$0xff]  }
  0x84   : > { %1614 = vmatpush1.bf16.msra.mxu0 %v4127_v26  ;;  %1696 = vmatpush1.bf16.msra.mxu1 %v4128_v27  ;;  %v4200_v15 = vld [vmem:[#allocation5 + $0x518] ss:$36 sps:$4 sm:$0xff]   ;;  %v4208_v17 = vld [vmem:[#allocation5 + $0x564] ss:$36 sps:$4 sm:$0xff]   ;;  %v4214_v21 = vld [vmem:[#allocation5 + $0x5ac] ss:$36 sps:$4 sm:$0xff]  }
  0x85   : > { %1615 = vmatprep.subr.bf16.mxu0 %v4129_v28  ;;  %1697 = vmatprep.subr.bf16.mxu1 %v4131_v29  ;;  %v4205_v16 = vld [vmem:[#allocation5 + $0x55c] ss:$36 sps:$4 sm:$0xff]   ;;  %v4211_v20 = vld [vmem:[#allocation5 + $0x5a4] ss:$36 sps:$4 sm:$0xff]   ;;  %v4217_v24 = vld [vmem:[#allocation5 + $0x5ec] ss:$36 sps:$4 sm:$0xff]  }
  0x86   : > { %v4203_v18 = vld [vmem:[#allocation5 + $0x558] ss:$36 sps:$4 sm:$0xff]   ;;  %v4206_v19 = vld [vmem:[#allocation5 + $0x560] ss:$36 sps:$4 sm:$0xff]   ;;  %v4212_v23 = vld [vmem:[#allocation5 + $0x5a8] ss:$36 sps:$4 sm:$0xff]  }
  0x87   : > { %v4209_v22 = vld [vmem:[#allocation5 + $0x5a0] ss:$36 sps:$4 sm:$0xff]   ;;  %v4220_v25 = vld [vmem:[#allocation5 + $0x5f4] ss:$36 sps:$4 sm:$0xff]   ;;  %v4215_v26 = vld [vmem:[#allocation5 + $0x5e8] ss:$36 sps:$4 sm:$0xff]  }
  0x88   : > { %1616 = vmatpush1.bf16.msra.mxu0 %v4133_v30  ;;  %1698 = vmatpush1.bf16.msra.mxu1 %v4134_v31  ;;  %v4218_v27 = vld [vmem:[#allocation5 + $0x5f0] ss:$36 sps:$4 sm:$0xff]   ;;  %v4226_v29 = vld [vmem:[#allocation5 + $0x63c] ss:$36 sps:$4 sm:$0xff]   ;;  %s4690_s21 = smov 64   ;;  %vm2085_vm2 = vcmask 1043456  }
  0x89   : > { %1617 = vmatprep.subr.bf16.mxu0 %v4135_v32  ;;  %1699 = vmatprep.subr.bf16.mxu1 %v4137_v33  ;;  %v4223_v28 = vld [vmem:[#allocation5 + $0x634] ss:$36 sps:$4 sm:$0xff]   ;;  %v4229_v32 = vld [vmem:[#allocation5 + $0x67c] ss:$36 sps:$4 sm:$0xff]   ;;  %v4232_v33 = vld [vmem:[#allocation5 + $0x684] ss:$36 sps:$4 sm:$0xff]  }
  0x8a   : > { %v4221_v30 = vld [vmem:[#allocation5 + $0x630] ss:$36 sps:$4 sm:$0xff]   ;;  %v4224_v31 = vld [vmem:[#allocation5 + $0x638] ss:$36 sps:$4 sm:$0xff]   ;;  %vm2071_vm4 = vcmask 64512   ;;  %s4009_s23 = smul.u32 24, %s4887_s6 }
  0x8b   : > { %v4287_v46 = vld [vmem:[#allocation5 + $0xac] ss:$36 sps:$4 sm:$0xff]   ;;  %s4010_s25 = smul.u32 384, %s4739_s19  ;;  %s3368_s19 = scalar_lea.sflag [#allocation4], %s4887_s6 }
  0x8c   : > { %1618 = vmatpush1.bf16.msra.mxu0 %v4139_v34  ;;  %1700 = vmatpush1.bf16.msra.mxu1 %v4140_v35  ;;  %v4227_v34 = vld [vmem:[#allocation5 + $0x678] ss:$36 sps:$4 sm:$0xff]   ;;  %v4230_v35 = vld [vmem:[#allocation5 + $0x680] ss:$36 sps:$4 sm:$0xff]   ;;  %s242_s7 = scalar_lea.vmem [#allocation8], %s4009_s23  ;;  %p5156_p0 = scmp.ne.s32.totalorder %s5151_s20, 0 }
  0x8d   : > { %1619 = vmatprep.subr.bf16.mxu0 %v4141_v36  ;;  %1701 = vmatprep.subr.bf16.mxu1 %v4143_v37  ;;  %v4236_v36 = vld [vmem:[#allocation5 + $0x14] ss:$36 sps:$4 sm:$0xff]   ;;  %v4275_v37 = vld [vmem:[#allocation5 + $0x1c] ss:$36 sps:$4 sm:$0xff]   ;;  %s3382_s12 = sshll.u32 %s242_s7, 4  ;;  %s5094_s26 = scalar_lea.hbm %s5142_s4, %s4010_s25  ;;  %s5096_s12 = int_to_ptr.vmem [resolvable:$true] %s3382_s12 }
  0x8e   : > { %s4608_s24 = scalar_lea.vmem %s5096_s12, 384  ;;  %s4692_s29 = smov [#allocation8]  }
  0x8f   : > { %p4609_p11 = scmp.ne.s32.totalorder %s5096_s12, %s4608_s24  ;;  %s4612_s30 = sshll.u32 %s4692_s29, 4  ;;  %s4613_s30 = int_to_ptr.vmem [resolvable:$false] %s4612_s30 }
  0x90   : > { %1620 = vmatpush1.bf16.msra.mxu0 %v4145_v38  ;;  %1702 = vmatpush1.bf16.msra.mxu1 %v4146_v39  ;;  %v4913_v38 = vld [vmem:[%s4891_s10 + $0x8] ss:$0 sps:$4 sm:$0xff]   ;;  %s4614_s8 = scalar_lea.vmem %s4613_s30, 768  ;;  %p4615_p5 = scmp.lt.s32.totalorder %s5096_s12, %s4613_s30 }
  0x91   : > { %1621 = vmatprep.subr.bf16.mxu0 %v4147_v40  ;;  %1703 = vmatprep.subr.bf16.mxu1 %v4149_v41  ;;  %v4234_v39 = vld [vmem:[#allocation5 + $0x10] ss:$36 sps:$4 sm:$0xff]   ;;  %v4239_v40 = vld [vmem:[#allocation5 + $0x5c] ss:$36 sps:$4 sm:$0xff]   ;;  %p4610_p1 = pnand %p4609_p11, %p5156_p0  ;;  %p4616_p9 = scmp.lt.s32.totalorder %s4614_s8, %s4608_s24 }
  0x92   : > { %v4273_v41 = vld [vmem:[#allocation5 + $0x18] ss:$36 sps:$4 sm:$0xff]  }
  0x93   : > { %p4611_p3 = pneg %p4610_p1  ;;  %p4617_p12 = por %p4616_p9, %p4615_p5 }
  0x94   : > { %1622 = vmatpush1.bf16.msra.mxu0 %v4151_v42  ;;  %1704 = vmatpush1.bf16.msra.mxu1 %v4152_v43  ;;  %v4281_v42 = vld [vmem:[#allocation5 + $0x64] ss:$36 sps:$4 sm:$0xff]   ;;  %v4237_v43 = vld [vmem:[#allocation5 + $0x58] ss:$36 sps:$4 sm:$0xff]  }
  0x95   : > { %1623 = vmatprep.subr.bf16.mxu0 %v4153_v44  ;;  %1705 = vmatprep.subr.bf16.mxu1 %v4155_v45  ;;  %v4242_v44 = vld [vmem:[#allocation5 + $0xa4] ss:$36 sps:$4 sm:$0xff]   ;;  %p4618_p2 = pnand %p4617_p12, %p4611_p3 }
  0x96   : > { %v4279_v45 = vld [vmem:[#allocation5 + $0x60] ss:$36 sps:$4 sm:$0xff]  }
  0x98   : > { %1624 = vmatpush1.bf16.msra.mxu0 %v4157_v47  ;;  %1706 = vmatpush1.bf16.msra.mxu1 %v4158_v49  ;;  %v4240_v47 = vld [vmem:[#allocation5 + $0xa0] ss:$36 sps:$4 sm:$0xff]   ;;  %v4245_v49 = vld [vmem:[#allocation5 + $0xec] ss:$36 sps:$4 sm:$0xff]  }
  0x99   : > { %1625 = vmatprep.subr.bf16.mxu0 %v4159_v50  ;;  %1707 = vmatprep.subr.bf16.mxu1 %v4161_v51  ;;  %v4285_v50 = vld [vmem:[#allocation5 + $0xa8] ss:$36 sps:$4 sm:$0xff]   ;;  %v4293_v51 = vld [vmem:[#allocation5 + $0xf4] ss:$36 sps:$4 sm:$0xff]  }
  0x9c   : > { %1626 = vmatpush1.bf16.msra.mxu0 %v4163_v52  ;;  %1708 = vmatpush1.bf16.msra.mxu1 %v4164_v53  ;;  %v4243_v52 = vld [vmem:[#allocation5 + $0xe8] ss:$36 sps:$4 sm:$0xff]   ;;  %v4248_v53 = vld [vmem:[#allocation5 + $0x134] ss:$36 sps:$4 sm:$0xff]  }
  0x9d   : > { %1627 = vmatprep.subr.bf16.mxu0 %v4165_v54  ;;  %1709 = vmatprep.subr.bf16.mxu1 %v4167_v55  ;;  %v4291_v54 = vld [vmem:[#allocation5 + $0xf0] ss:$36 sps:$4 sm:$0xff]   ;;  %v4299_v55 = vld [vmem:[#allocation5 + $0x13c] ss:$36 sps:$4 sm:$0xff]  }
  0xa0   : > { %1628 = vmatpush1.bf16.msra.mxu0 %v4169_v56  ;;  %1710 = vmatpush1.bf16.msra.mxu1 %v4170_v57  ;;  %v4246_v56 = vld [vmem:[#allocation5 + $0x130] ss:$36 sps:$4 sm:$0xff]   ;;  %v4251_v57 = vld [vmem:[#allocation5 + $0x17c] ss:$36 sps:$4 sm:$0xff]  }
  0xa1   : > { %1629 = vmatprep.subr.bf16.mxu0 %v4171_v58  ;;  %1711 = vmatprep.subr.bf16.mxu1 %v4173_v59  ;;  %v4297_v58 = vld [vmem:[#allocation5 + $0x138] ss:$36 sps:$4 sm:$0xff]   ;;  %v4305_v59 = vld [vmem:[#allocation5 + $0x184] ss:$36 sps:$4 sm:$0xff]  }
  0xa4   : > { %1630 = vmatpush1.bf16.msra.mxu0 %v4175_v60  ;;  %1712 = vmatpush1.bf16.msra.mxu1 %v4176_v61  ;;  %v4249_v60 = vld [vmem:[#allocation5 + $0x178] ss:$36 sps:$4 sm:$0xff]   ;;  %v4254_v61 = vld [vmem:[#allocation5 + $0x1c4] ss:$36 sps:$4 sm:$0xff]  }
  0xa5   : > { %1631 = vmatprep.subr.bf16.mxu0 %v4177_v62  ;;  %1713 = vmatprep.subr.bf16.mxu1 %v4179_v63  ;;  %v4303_v62 = vld [vmem:[#allocation5 + $0x180] ss:$36 sps:$4 sm:$0xff]   ;;  %v4311_v63 = vld [vmem:[#allocation5 + $0x1cc] ss:$36 sps:$4 sm:$0xff]  }
  0xa8   : > { %1632 = vmatpush1.bf16.msra.mxu0 %v4181_v0  ;;  %1714 = vmatpush1.bf16.msra.mxu1 %v4182_v1  ;;  %v4252_v0 = vld [vmem:[#allocation5 + $0x1c0] ss:$36 sps:$4 sm:$0xff]   ;;  %v4257_v1 = vld [vmem:[#allocation5 + $0x20c] ss:$36 sps:$4 sm:$0xff]  }
  0xa9   : > { %1642 = vmatprep.subr.bf16.mxu0 %v4186_v2  ;;  %1724 = vmatprep.subr.bf16.mxu1 %v4189_v3  ;;  %v4309_v2 = vld [vmem:[#allocation5 + $0x1c8] ss:$36 sps:$4 sm:$0xff]   ;;  %v4317_v3 = vld [vmem:[#allocation5 + $0x214] ss:$36 sps:$4 sm:$0xff]  }
  0xab   : > { %1634 = vmatmul.mubr.bf16.vlgmr.msra.gmra.mrb[0].mxu0 %v4906_v5  ;;  %1716 = vmatmul.mubr.bf16.vlgmr.msra.gmra.mrb[0].mxu1 %v4906_v5 }
  0xac   : > { %1643 = vmatpush1.bf16.msra.mxu0 %v4184_v4  ;;  %1725 = vmatpush1.bf16.msra.mxu1 %v4187_v6  ;;  %v4255_v4 = vld [vmem:[#allocation5 + $0x208] ss:$36 sps:$4 sm:$0xff]   ;;  %v4260_v6 = vld [vmem:[#allocation5 + $0x254] ss:$36 sps:$4 sm:$0xff]  }
  0xad   : > { %1644 = vmatprep.subr.bf16.mxu0 %v4193_v7  ;;  %1726 = vmatprep.subr.bf16.mxu1 %v4196_v8  ;;  %v4315_v7 = vld [vmem:[#allocation5 + $0x210] ss:$36 sps:$4 sm:$0xff]   ;;  %v4323_v8 = vld [vmem:[#allocation5 + $0x25c] ss:$36 sps:$4 sm:$0xff]  }
  0xae   : > { %1674 = vmatprep.mubr.bf16.mxu0 %v4687_v13  ;;  %1756 = vmatprep.mubr.bf16.mxu1 %v4687_v13 }
  0xb0   : > { %1645 = vmatpush1.bf16.msra.mxu0 %v4191_v9  ;;  %1727 = vmatpush1.bf16.msra.mxu1 %v4194_v10  ;;  %v4258_v9 = vld [vmem:[#allocation5 + $0x250] ss:$36 sps:$4 sm:$0xff]   ;;  %v4263_v10 = vld [vmem:[#allocation5 + $0x29c] ss:$36 sps:$4 sm:$0xff]  }
  0xb1   : > { %1646 = vmatprep.subr.bf16.mxu0 %v4199_v11  ;;  %1728 = vmatprep.subr.bf16.mxu1 %v4202_v12  ;;  %v4321_v11 = vld [vmem:[#allocation5 + $0x258] ss:$36 sps:$4 sm:$0xff]   ;;  %v4329_v12 = vld [vmem:[#allocation5 + $0x2a4] ss:$36 sps:$4 sm:$0xff]  }
  0xb4   : > { %1647 = vmatpush1.bf16.msra.mxu0 %v4197_v14  ;;  %1729 = vmatpush1.bf16.msra.mxu1 %v4200_v15  ;;  %v4261_v14 = vld [vmem:[#allocation5 + $0x298] ss:$36 sps:$4 sm:$0xff]   ;;  %v4266_v15 = vld [vmem:[#allocation5 + $0x2e4] ss:$36 sps:$4 sm:$0xff]  }
  0xb5   : > { %1648 = vmatprep.subr.bf16.mxu0 %v4205_v16  ;;  %1730 = vmatprep.subr.bf16.mxu1 %v4208_v17  ;;  %v4327_v16 = vld [vmem:[#allocation5 + $0x2a0] ss:$36 sps:$4 sm:$0xff]   ;;  %v4335_v17 = vld [vmem:[#allocation5 + $0x2ec] ss:$36 sps:$4 sm:$0xff]  }
  0xb8   : > { %1649 = vmatpush1.bf16.msra.mxu0 %v4203_v18  ;;  %1731 = vmatpush1.bf16.msra.mxu1 %v4206_v19  ;;  %v4264_v18 = vld [vmem:[#allocation5 + $0x2e0] ss:$36 sps:$4 sm:$0xff]   ;;  %v4269_v19 = vld [vmem:[#allocation5 + $0x32c] ss:$36 sps:$4 sm:$0xff]  }
  0xb9   : > { %1650 = vmatprep.subr.bf16.mxu0 %v4211_v20  ;;  %1732 = vmatprep.subr.bf16.mxu1 %v4214_v21  ;;  %v4333_v20 = vld [vmem:[#allocation5 + $0x2e8] ss:$36 sps:$4 sm:$0xff]   ;;  %v4341_v21 = vld [vmem:[#allocation5 + $0x334] ss:$36 sps:$4 sm:$0xff]  }
  0xbc   : > { %1651 = vmatpush1.bf16.msra.mxu0 %v4209_v22  ;;  %1733 = vmatpush1.bf16.msra.mxu1 %v4212_v23  ;;  %v4267_v22 = vld [vmem:[#allocation5 + $0x328] ss:$36 sps:$4 sm:$0xff]   ;;  %v4272_v23 = vld [vmem:[#allocation5 + $0x374] ss:$36 sps:$4 sm:$0xff]  }
  0xbd   : > { %1652 = vmatprep.subr.bf16.mxu0 %v4217_v24  ;;  %1734 = vmatprep.subr.bf16.mxu1 %v4220_v25  ;;  %v4339_v24 = vld [vmem:[#allocation5 + $0x330] ss:$36 sps:$4 sm:$0xff]   ;;  %v4344_v25 = vld [vmem:[#allocation5 + $0x37c] ss:$36 sps:$4 sm:$0xff]  }
  0xc0   : > { %1653 = vmatpush1.bf16.msra.mxu0 %v4215_v26  ;;  %1735 = vmatpush1.bf16.msra.mxu1 %v4218_v27  ;;  %v4270_v26 = vld [vmem:[#allocation5 + $0x370] ss:$36 sps:$4 sm:$0xff]   ;;  %v4278_v27 = vld [vmem:[#allocation5 + $0x3bc] ss:$36 sps:$4 sm:$0xff]  }
  0xc1   : > { %1654 = vmatprep.subr.bf16.mxu0 %v4223_v28  ;;  %1736 = vmatprep.subr.bf16.mxu1 %v4226_v29  ;;  %v4342_v28 = vld [vmem:[#allocation5 + $0x378] ss:$36 sps:$4 sm:$0xff]   ;;  %v4347_v29 = vld [vmem:[#allocation5 + $0x3c4] ss:$36 sps:$4 sm:$0xff]  }
  0xc4   : > { %1655 = vmatpush1.bf16.msra.mxu0 %v4221_v30  ;;  %1737 = vmatpush1.bf16.msra.mxu1 %v4224_v31  ;;  %v4276_v30 = vld [vmem:[#allocation5 + $0x3b8] ss:$36 sps:$4 sm:$0xff]   ;;  %v4284_v31 = vld [vmem:[#allocation5 + $0x404] ss:$36 sps:$4 sm:$0xff]  }
  0xc5   : > { %1656 = vmatprep.subr.bf16.mxu0 %v4229_v32  ;;  %1738 = vmatprep.subr.bf16.mxu1 %v4232_v33  ;;  %v4345_v32 = vld [vmem:[#allocation5 + $0x3c0] ss:$36 sps:$4 sm:$0xff]   ;;  %v4350_v33 = vld [vmem:[#allocation5 + $0x40c] ss:$36 sps:$4 sm:$0xff]  }
  0xc8   : > { %1657 = vmatpush1.bf16.msra.mxu0 %v4227_v34  ;;  %1739 = vmatpush1.bf16.msra.mxu1 %v4230_v35  ;;  %v4282_v34 = vld [vmem:[#allocation5 + $0x400] ss:$36 sps:$4 sm:$0xff]   ;;  %v4290_v35 = vld [vmem:[#allocation5 + $0x44c] ss:$36 sps:$4 sm:$0xff]  }
  0xc9   : > { %1765 = vmatprep.subr.bf16.mxu0 %v4236_v36  ;;  %1847 = vmatprep.subr.bf16.mxu1 %v4275_v37  ;;  %v4348_v36 = vld [vmem:[#allocation5 + $0x408] ss:$36 sps:$4 sm:$0xff]   ;;  %v4353_v37 = vld [vmem:[#allocation5 + $0x454] ss:$36 sps:$4 sm:$0xff]  }
  0xcb   : > { %1675 = vmatmul.mubr.bf16.vlgmr.msra.gmra.mrb[0].mxu0 %v4913_v38  ;;  %1757 = vmatmul.mubr.bf16.vlgmr.msra.gmra.mrb[0].mxu1 %v4913_v38 }
  0xcc   : > { %1766 = vmatpush1.bf16.msra.mxu0 %v4234_v39  ;;  %1848 = vmatpush1.bf16.msra.mxu1 %v4273_v41  ;;  %v4288_v39 = vld [vmem:[#allocation5 + $0x448] ss:$36 sps:$4 sm:$0xff]   ;;  %v4296_v41 = vld [vmem:[#allocation5 + $0x494] ss:$36 sps:$4 sm:$0xff]  }
  0xcd   : > { %1767 = vmatprep.subr.bf16.mxu0 %v4239_v40  ;;  %1849 = vmatprep.subr.bf16.mxu1 %v4281_v42  ;;  %v4351_v40 = vld [vmem:[#allocation5 + $0x450] ss:$36 sps:$4 sm:$0xff]   ;;  %v4356_v42 = vld [vmem:[#allocation5 + $0x49c] ss:$36 sps:$4 sm:$0xff]  }
  0xce   : > { %1797 = vmatprep.mubr.bf16.mxu0 %v4902_v48  ;;  %1879 = vmatprep.mubr.bf16.mxu1 %v4902_v48 }
  0xd0   : > { %1768 = vmatpush1.bf16.msra.mxu0 %v4237_v43  ;;  %1850 = vmatpush1.bf16.msra.mxu1 %v4279_v45  ;;  %v4294_v43 = vld [vmem:[#allocation5 + $0x490] ss:$36 sps:$4 sm:$0xff]   ;;  %v4354_v45 = vld [vmem:[#allocation5 + $0x498] ss:$36 sps:$4 sm:$0xff]  }
  0xd1   : > { %1769 = vmatprep.subr.bf16.mxu0 %v4242_v44  ;;  %1851 = vmatprep.subr.bf16.mxu1 %v4287_v46  ;;  %v4302_v44 = vld [vmem:[#allocation5 + $0x4dc] ss:$36 sps:$4 sm:$0xff]   ;;  %v4359_v46 = vld [vmem:[#allocation5 + $0x4e4] ss:$36 sps:$4 sm:$0xff]  }
  0xd4   : > { %1770 = vmatpush1.bf16.msra.mxu0 %v4240_v47  ;;  %1852 = vmatpush1.bf16.msra.mxu1 %v4285_v50  ;;  %v4300_v47 = vld [vmem:[#allocation5 + $0x4d8] ss:$36 sps:$4 sm:$0xff]   ;;  %v4357_v50 = vld [vmem:[#allocation5 + $0x4e0] ss:$36 sps:$4 sm:$0xff]  }
  0xd5   : > { %1771 = vmatprep.subr.bf16.mxu0 %v4245_v49  ;;  %1853 = vmatprep.subr.bf16.mxu1 %v4293_v51  ;;  %v4308_v49 = vld [vmem:[#allocation5 + $0x524] ss:$36 sps:$4 sm:$0xff]   ;;  %v4362_v51 = vld [vmem:[#allocation5 + $0x52c] ss:$36 sps:$4 sm:$0xff]  }
  0xd8   : > { %1772 = vmatpush1.bf16.msra.mxu0 %v4243_v52  ;;  %1854 = vmatpush1.bf16.msra.mxu1 %v4291_v54  ;;  %v4306_v52 = vld [vmem:[#allocation5 + $0x520] ss:$36 sps:$4 sm:$0xff]   ;;  %v4360_v54 = vld [vmem:[#allocation5 + $0x528] ss:$36 sps:$4 sm:$0xff]  }
  0xd9   : > { %1773 = vmatprep.subr.bf16.mxu0 %v4248_v53  ;;  %1855 = vmatprep.subr.bf16.mxu1 %v4299_v55  ;;  %v4314_v53 = vld [vmem:[#allocation5 + $0x56c] ss:$36 sps:$4 sm:$0xff]   ;;  %v4365_v55 = vld [vmem:[#allocation5 + $0x574] ss:$36 sps:$4 sm:$0xff]  }
  0xdc   : > { %1774 = vmatpush1.bf16.msra.mxu0 %v4246_v56  ;;  %1856 = vmatpush1.bf16.msra.mxu1 %v4297_v58  ;;  %v4312_v56 = vld [vmem:[#allocation5 + $0x568] ss:$36 sps:$4 sm:$0xff]   ;;  %v4363_v58 = vld [vmem:[#allocation5 + $0x570] ss:$36 sps:$4 sm:$0xff]  }
  0xdd   : > { %1775 = vmatprep.subr.bf16.mxu0 %v4251_v57  ;;  %1857 = vmatprep.subr.bf16.mxu1 %v4305_v59  ;;  %v4320_v57 = vld [vmem:[#allocation5 + $0x5b4] ss:$36 sps:$4 sm:$0xff]   ;;  %v4368_v59 = vld [vmem:[#allocation5 + $0x5bc] ss:$36 sps:$4 sm:$0xff]  }
  0xe0   : > { %1776 = vmatpush1.bf16.msra.mxu0 %v4249_v60  ;;  %1858 = vmatpush1.bf16.msra.mxu1 %v4303_v62  ;;  %v4318_v60 = vld [vmem:[#allocation5 + $0x5b0] ss:$36 sps:$4 sm:$0xff]   ;;  %v4366_v62 = vld [vmem:[#allocation5 + $0x5b8] ss:$36 sps:$4 sm:$0xff]  }
  0xe1   : > { %1777 = vmatprep.subr.bf16.mxu0 %v4254_v61  ;;  %1859 = vmatprep.subr.bf16.mxu1 %v4311_v63  ;;  %v4326_v61 = vld [vmem:[#allocation5 + $0x5fc] ss:$36 sps:$4 sm:$0xff]   ;;  %v4371_v63 = vld [vmem:[#allocation5 + $0x604] ss:$36 sps:$4 sm:$0xff]  }
  0xe4   : > { %1778 = vmatpush1.bf16.msra.mxu0 %v4252_v0  ;;  %1860 = vmatpush1.bf16.msra.mxu1 %v4309_v2  ;;  %v4324_v0 = vld [vmem:[#allocation5 + $0x5f8] ss:$36 sps:$4 sm:$0xff]   ;;  %v4369_v2 = vld [vmem:[#allocation5 + $0x600] ss:$36 sps:$4 sm:$0xff]  }
  0xe5   : > { %1779 = vmatprep.subr.bf16.mxu0 %v4257_v1  ;;  %1861 = vmatprep.subr.bf16.mxu1 %v4317_v3  ;;  %v4332_v1 = vld [vmem:[#allocation5 + $0x644] ss:$36 sps:$4 sm:$0xff]   ;;  %v4374_v3 = vld [vmem:[#allocation5 + $0x64c] ss:$36 sps:$4 sm:$0xff]  }
  0xe8   : > { %1780 = vmatpush1.bf16.msra.mxu0 %v4255_v4  ;;  %1862 = vmatpush1.bf16.msra.mxu1 %v4315_v7  ;;  %v4330_v4 = vld [vmem:[#allocation5 + $0x640] ss:$36 sps:$4 sm:$0xff]   ;;  %v4372_v7 = vld [vmem:[#allocation5 + $0x648] ss:$36 sps:$4 sm:$0xff]  }
  0xe9   : > { %1781 = vmatprep.subr.bf16.mxu0 %v4260_v6  ;;  %1863 = vmatprep.subr.bf16.mxu1 %v4323_v8  ;;  %v4338_v6 = vld [vmem:[#allocation5 + $0x68c] ss:$36 sps:$4 sm:$0xff]   ;;  %v4377_v8 = vld [vmem:[#allocation5 + $0x694] ss:$36 sps:$4 sm:$0xff]  }
  0xec   : > { %1782 = vmatpush1.bf16.msra.mxu0 %v4258_v9  ;;  %1864 = vmatpush1.bf16.msra.mxu1 %v4321_v11  ;;  %v4336_v9 = vld [vmem:[#allocation5 + $0x688] ss:$36 sps:$4 sm:$0xff]   ;;  %v4379_v11 = vld [vmem:[#allocation5 + $0x260] ss:$36 sps:$4 sm:$0xff]  }
  0xed   : > { %1783 = vmatprep.subr.bf16.mxu0 %v4263_v10  ;;  %1865 = vmatprep.subr.bf16.mxu1 %v4329_v12  ;;  %v4375_v10 = vld [vmem:[#allocation5 + $0x690] ss:$36 sps:$4 sm:$0xff]   ;;  %v4380_v12 = vld [vmem:[#allocation5 + $0x20] ss:$36 sps:$4 sm:$0xff]  }
  0xf0   : > { %1784 = vmatpush1.bf16.msra.mxu0 %v4261_v14  ;;  %1866 = vmatpush1.bf16.msra.mxu1 %v4327_v16  ;;  %v4378_v14 = vld [vmem:[#allocation5 + $0x4a0] ss:$36 sps:$4 sm:$0xff]   ;;  %v4688_v16 = vmov 0.0  }
  0xf1   : > { %1785 = vmatprep.subr.bf16.mxu0 %v4266_v15  ;;  %1867 = vmatprep.subr.bf16.mxu1 %v4335_v17  ;;  %v4382_v15 = vld [vmem:[#allocation5 + $0x2a8] ss:$36 sps:$4 sm:$0xff]  }
  0xf2   : > { %v4383_v17 = vld [vmem:[#allocation5 + $0x68] ss:$36 sps:$4 sm:$0xff]  }
  0xf4   : > { %1786 = vmatpush1.bf16.msra.mxu0 %v4264_v18  ;;  %1868 = vmatpush1.bf16.msra.mxu1 %v4333_v20  ;;  %v4381_v18 = vld [vmem:[#allocation5 + $0x4e8] ss:$36 sps:$4 sm:$0xff]   ;;  %v4386_v20 = vld [vmem:[#allocation5 + $0xb0] ss:$36 sps:$4 sm:$0xff]  }
  0xf5   : > { %1787 = vmatprep.subr.bf16.mxu0 %v4269_v19  ;;  %1869 = vmatprep.subr.bf16.mxu1 %v4341_v21  ;;  %v4385_v19 = vld [vmem:[#allocation5 + $0x2f0] ss:$36 sps:$4 sm:$0xff]  }
  0xf6   : > { %v4384_v21 = vld [vmem:[#allocation5 + $0x530] ss:$36 sps:$4 sm:$0xff]  }
  0xf8   : > { %1788 = vmatpush1.bf16.msra.mxu0 %v4267_v22  ;;  %1870 = vmatpush1.bf16.msra.mxu1 %v4339_v24  ;;  %v4388_v22 = vld [vmem:[#allocation5 + $0x338] ss:$36 sps:$4 sm:$0xff]  }
  0xf9   : > { %1789 = vmatprep.subr.bf16.mxu0 %v4272_v23  ;;  %1871 = vmatprep.subr.bf16.mxu1 %v4344_v25  ;;  %v4389_v23 = vld [vmem:[#allocation5 + $0xf8] ss:$36 sps:$4 sm:$0xff]   ;;  %v4391_v25 = vld [vmem:[#allocation5 + $0x380] ss:$36 sps:$4 sm:$0xff]  }
  0xfa   : > { %v4387_v24 = vld [vmem:[#allocation5 + $0x578] ss:$36 sps:$4 sm:$0xff]  }
  0xfc   : > { %1790 = vmatpush1.bf16.msra.mxu0 %v4270_v26  ;;  %1872 = vmatpush1.bf16.msra.mxu1 %v4342_v28  ;;  %v4390_v26 = vld [vmem:[#allocation5 + $0x5c0] ss:$36 sps:$4 sm:$0xff]   ;;  %v4395_v28 = vld [vmem:[#allocation5 + $0x188] ss:$36 sps:$4 sm:$0xff]  }
  0xfd   : > { %1791 = vmatprep.subr.bf16.mxu0 %v4278_v27  ;;  %1873 = vmatprep.subr.bf16.mxu1 %v4347_v29  ;;  %v4394_v27 = vld [vmem:[#allocation5 + $0x3c8] ss:$36 sps:$4 sm:$0xff]  }
  0xfe   : > { %v4393_v29 = vld [vmem:[#allocation5 + $0x608] ss:$36 sps:$4 sm:$0xff]  }
 0x100   : > { %1792 = vmatpush1.bf16.msra.mxu0 %v4276_v30  ;;  %1874 = vmatpush1.bf16.msra.mxu1 %v4345_v32  ;;  %v4397_v30 = vld [vmem:[#allocation5 + $0x410] ss:$36 sps:$4 sm:$0xff]  }
 0x101   : > { %1793 = vmatprep.subr.bf16.mxu0 %v4284_v31  ;;  %1875 = vmatprep.subr.bf16.mxu1 %v4350_v33  ;;  %v4398_v31 = vld [vmem:[#allocation5 + $0x1d0] ss:$36 sps:$4 sm:$0xff]   ;;  %v4400_v33 = vld [vmem:[#allocation5 + $0x458] ss:$36 sps:$4 sm:$0xff]  }
 0x102   : > { %v4396_v32 = vld [vmem:[#allocation5 + $0x650] ss:$36 sps:$4 sm:$0xff]  }
 0x104   : > { %1794 = vmatpush1.bf16.msra.mxu0 %v4282_v34  ;;  %1876 = vmatpush1.bf16.msra.mxu1 %v4348_v36  ;;  %v4401_v34 = vld [vmem:[#allocation5 + $0x218] ss:$36 sps:$4 sm:$0xff]  }
 0x105   : > { %1795 = vmatprep.subr.bf16.mxu0 %v4290_v35  ;;  %1877 = vmatprep.subr.bf16.mxu1 %v4353_v37  ;;  %v4399_v35 = vld [vmem:[#allocation5 + $0x698] ss:$36 sps:$4 sm:$0xff]  }
 0x108   : > { %1796 = vmatpush1.bf16.msra.mxu0 %v4288_v39  ;;  %1878 = vmatpush1.bf16.msra.mxu1 %v4351_v40 }
 0x109   : > { %1806 = vmatprep.subr.bf16.mxu0 %v4296_v41  ;;  %1888 = vmatprep.subr.bf16.mxu1 %v4356_v42 }
 0x10b   : > { %1798 = vmatmul.mubr.bf16.vlgmr.msra.gmra.mrb[4].mxu0 %v4906_v5  ;;  %1880 = vmatmul.mubr.bf16.vlgmr.msra.gmra.mrb[4].mxu1 %v4906_v5 }
 0x10c   : > { %1807 = vmatpush1.bf16.msra.mxu0 %v4294_v43  ;;  %1838 = vmatprep.mubr.bf16.mxu0 %v4687_v13 }
 0x10d   : > { %1808 = vmatprep.subr.bf16.mxu0 %v4302_v44  ;;  %1889 = vmatpush1.bf16.msra.mxu1 %v4354_v45 }
 0x10e   : > { %1890 = vmatprep.subr.bf16.mxu1 %v4359_v46  ;;  %1920 = vmatprep.mubr.bf16.mxu1 %v4687_v13 }
 0x110   : > { %1809 = vmatpush1.bf16.msra.mxu0 %v4300_v47 }
 0x111   : > { %1810 = vmatprep.subr.bf16.mxu0 %v4308_v49  ;;  %1891 = vmatpush1.bf16.msra.mxu1 %v4357_v50 }
 0x112   : > { %1892 = vmatprep.subr.bf16.mxu1 %v4362_v51 }
 0x114   : > { %1811 = vmatpush1.bf16.msra.mxu0 %v4306_v52 }
 0x115   : > { %1812 = vmatprep.subr.bf16.mxu0 %v4314_v53  ;;  %1893 = vmatpush1.bf16.msra.mxu1 %v4360_v54 }
 0x116   : > { %1894 = vmatprep.subr.bf16.mxu1 %v4365_v55 }
 0x118   : > { %1813 = vmatpush1.bf16.msra.mxu0 %v4312_v56 }
 0x119   : > { %1814 = vmatprep.subr.bf16.mxu0 %v4320_v57  ;;  %1895 = vmatpush1.bf16.msra.mxu1 %v4363_v58 }
 0x11a   : > { %1896 = vmatprep.subr.bf16.mxu1 %v4368_v59 }
 0x11c   : > { %1815 = vmatpush1.bf16.msra.mxu0 %v4318_v60 }
 0x11d   : > { %1816 = vmatprep.subr.bf16.mxu0 %v4326_v61  ;;  %1897 = vmatpush1.bf16.msra.mxu1 %v4366_v62 }
 0x11e   : > { %1898 = vmatprep.subr.bf16.mxu1 %v4371_v63 }
 0x120   : > { %1817 = vmatpush1.bf16.msra.mxu0 %v4324_v0 }
 0x121   : > { %1818 = vmatprep.subr.bf16.mxu0 %v4332_v1  ;;  %1899 = vmatpush1.bf16.msra.mxu1 %v4369_v2 }
 0x122   : > { %1900 = vmatprep.subr.bf16.mxu1 %v4374_v3 }
 0x124   : > { %1819 = vmatpush1.bf16.msra.mxu0 %v4330_v4 }
 0x125   : > { %1820 = vmatprep.subr.bf16.mxu0 %v4338_v6  ;;  %1901 = vmatpush1.bf16.msra.mxu1 %v4372_v7 }
 0x126   : > { %1902 = vmatprep.subr.bf16.mxu1 %v4377_v8 }
 0x128   : > { %1821 = vmatpush1.bf16.msra.mxu0 %v4336_v9 }
 0x129   : > { %1903 = vmatpush1.bf16.msra.mxu1 %v4375_v10  ;;  %3786 = vmatprep.subr.bf16.mxu0 %v4379_v11  ;;  %v2018_v10 = vlaneseq }
 0x12a   : > { %3872 = vmatprep.subr.bf16.mxu1 %v4688_v16 }
 0x12b   : > { %1839 = vmatmul.mubr.bf16.vlgmr.msra.gmra.mrb[4].mxu0 %v4913_v38 }
 0x12c   : > { %1921 = vmatmul.mubr.bf16.vlgmr.msra.gmra.mrb[4].mxu1 %v4913_v38  ;;  %3787 = vmatpush3.bf16.msra.mxu0 %v4380_v12 }
 0x12d   : > { %3873 = vmatpush3.bf16.msra.mxu1 %v4378_v14  ;;  %3788 = vmatprep.subr.bf16.mxu0 %v4382_v15  ;;  %v4972_v14 = vshrl.u32 %v2018_v10, 7  ;;  %v2021_v15 = vand.u32 127, %v2018_v10 }
 0x12e   : > { %3874 = vmatprep.subr.bf16.mxu1 %v4688_v16  ;;  %1961 = vmatprep.mubr.bf16.mxu0 %v4902_v48  ;;  %v4392_v48 = vld [vmem:[#allocation5 + $0x140] ss:$36 sps:$4 sm:$0xff]  }
 0x12f   : > { %3888 = vmatprep.mubr.msk.bf16.mxu1 %vm4689_vm0, %v4688_v16  ;;  %vm2022_vm3 = vcmp.le.s32.totalorder %v2021_v15, %v4972_v14 }
 0x130   : > { %3789 = vmatpush3.bf16.msra.mxu0 %v4383_v17 }
 0x131   : > { %3875 = vmatpush3.bf16.msra.mxu1 %v4381_v18  ;;  %3790 = vmatprep.subr.bf16.mxu0 %v4385_v19  ;;  %v4691_v19 = vmov -1e+30  }
 0x132   : > { %3876 = vmatprep.subr.bf16.mxu1 %v4688_v16 }
 0x134   : > { %3791 = vmatpush3.bf16.msra.mxu0 %v4386_v20  ;;  %v4977_v20 = vsel %vm2022_vm3, 0.0, %v4691_v19 }
 0x135   : > { %3877 = vmatpush3.bf16.msra.mxu1 %v4384_v21  ;;  %3792 = vmatprep.subr.bf16.mxu0 %v4388_v22 }
 0x136   : > { %3878 = vmatprep.subr.bf16.mxu1 %v4688_v16 }
 0x138   : > { %3793 = vmatpush3.bf16.msra.mxu0 %v4389_v23 }
 0x139   : > { %3879 = vmatpush3.bf16.msra.mxu1 %v4387_v24  ;;  %3794 = vmatprep.subr.bf16.mxu0 %v4391_v25 }
 0x13a   : > { %3880 = vmatprep.subr.bf16.mxu1 %v4688_v16 }
 0x13c   : > { %3795 = vmatpush3.bf16.msra.mxu0 %v4392_v48 }
 0x13d   : > { %3881 = vmatpush3.bf16.msra.mxu1 %v4390_v26  ;;  %3796 = vmatprep.subr.bf16.mxu0 %v4394_v27 }
 0x13e   : > { %3882 = vmatprep.subr.bf16.mxu1 %v4688_v16 }
 0x140   : > { %3797 = vmatpush3.bf16.msra.mxu0 %v4395_v28 }
 0x141   : > { %3883 = vmatpush3.bf16.msra.mxu1 %v4393_v29  ;;  %3798 = vmatprep.subr.bf16.mxu0 %v4397_v30 }
 0x142   : > { %3884 = vmatprep.subr.bf16.mxu1 %v4688_v16 }
 0x144   : > { %3799 = vmatpush3.bf16.msra.mxu0 %v4398_v31 }
 0x145   : > { %3885 = vmatpush3.bf16.msra.mxu1 %v4396_v32  ;;  %3800 = vmatprep.subr.bf16.mxu0 %v4400_v33 }
 0x146   : > { %3886 = vmatprep.subr.bf16.mxu1 %v4688_v16 }
 0x148   : > { %3801 = vmatpush3.bf16.msra.mxu0 %v4401_v34 }
 0x149   : > { %3887 = vmatpush3.bf16.msra.mxu1 %v4399_v35  ;;  %3916 = vmatprep.subr.bf16.mxu0 %v4688_v16 }
 0x14a   : > { %3892 = vmatprep.subr.bf16.mxu1 %v4688_v16 }
 0x14b   : > { %1962 = vmatmul.mubr.bf16.vlgmr.msra.gmra.mrb[8].mxu0 %v4906_v5 }
 0x14c   : > { %3889 = vmatmul.mubr.bf16.vlgmr.msra.gmra.mrb[8].mxu1 %v4913_v38  ;;  %3918 = vmatprep.mubr.msk.bf16.mxu0 %vm4689_vm0, %v4688_v16 }
 0x14d   : > { %3894 = vmatprep.mubr.msk.bf16.mxu1 %vm4689_vm0, %v4688_v16 }
 0x19e   : > { %v1676_v36 = vpop.f32.mrb[0].mxu0  ;;  %v1758_v37 = vpop.f32.mrb[0].mxu1 }
 0x19f   : > { %v2009_v39 = vpack.c.bf16 %v1676_v36, %v1676_v36  ;;  %v1678_v40 = vpop.f32.mrb[1].mxu0  ;;  %v1760_v41 = vpop.f32.mrb[1].mxu1  ;;  %v2011_v61 = vpack.c.bf16 %v1758_v37, %v1758_v37 }
 0x1a0   : > { %v4944_v42 = vpack.c.bf16 %v1760_v41, %v1760_v41  ;;  %v1680_v43 = vpop.f32.mrb[2].mxu0  ;;  %v1762_v44 = vpop.f32.mrb[2].mxu1  ;;  %v2010_v59 = vpack.c.bf16 %v1678_v40, %v1678_v40 }
 0x1a1   : > { %v1763_v45 = vpop.f32.mrb[3].mxu1  ;;  %2133 = vrot.lane.b32.xlu1 %v2009_v39, %s4690_s21  ;;  %v1681_v5 = vpop.f32.mrb[3].mxu0 }
 0x1a2   : > { %v2029_v38 = vsel %vm2024_vm1, %v4944_v42, 0 }
 0x1a3   : > { %3893 = vmatpush3.bf16.xpose.msra.mxu1 %v2029_v38 }
 0x1a4   : > { %3898 = vmatprep.subr.bf16.mxu1 %v4688_v16 }
 0x1aa   : > { %3895 = vmatmul.mubr.msk.bf16.vlgmr.msra.gmra.mrb[12].mxu1 %vm2024_vm1, %v2009_v39 }
 0x1ab   : > { %3900 = vmatprep.mubr.msk.bf16.mxu1 %vm4689_vm0, %v4688_v16 }
 0x1fe   : > { %v1840_v46 = vpop.f32.mrb[4].mxu0 }
 0x1ff   : > { %v2013_v47 = vpack.c.bf16 %v1840_v46, %v1840_v46  ;;  %v1842_v49 = vpop.f32.mrb[5].mxu0  ;;  %v1922_v50 = vpop.f32.mrb[4].mxu1 }
 0x200   : > { %v4953_v51 = vpack.c.bf16 %v1922_v50, %v1922_v50  ;;  %v4955_v52 = vpop.f32.mrb[5].mxu1  ;;  %v1844_v53 = vpop.f32.mrb[6].mxu0  ;;  %v2014_v60 = vpack.c.bf16 %v1842_v49, %v1842_v49 }
 0x201   : > { %v2250_v54 = vsel %vm2024_vm1, %v2013_v47, 0  ;;  %2355 = vrot.lane.b32.xlu1 %v2013_v47, %s4690_s21  ;;  %v1926_v55 = vpop.f32.mrb[6].mxu1  ;;  %v1845_v56 = vpop.f32.mrb[7].mxu0 }
 0x202   : > { %3917 = vmatpush3.bf16.xpose.msra.mxu0 %v2250_v54  ;;  %v2087_v57 = vsel %vm2085_vm2, %v4953_v51, 0  ;;  %v1927_v58 = vpop.f32.mrb[7].mxu1  ;;  %v2469_v17 = vsel %vm2024_vm1, %v2014_v60, 0 }
 0x203   : > { %3899 = vmatpush3.bf16.msra.mxu1 %v2087_v57  ;;  %3928 = vmatprep.subr.bf16.mxu0 %v4688_v16 }
 0x204   : > { %3904 = vmatprep.subr.bf16.mxu1 %v4688_v16 }
 0x205   : > { %2352 = vrot.lane.b32.xlu1 %v2010_v59, %s4690_s21 }
 0x209   : > { %3919 = vmatmul.mubr.msk.bf16.vlgmr.msra.gmra.mrb[12].mxu0 %vm2024_vm1, %v2010_v59  ;;  %2574 = vrot.lane.b32.xlu1 %v2014_v60, %s4690_s21 }
 0x20a   : > { %3930 = vmatprep.mubr.msk.bf16.mxu0 %vm4689_vm0, %v4688_v16 }
 0x20d   : > { %2571 = vrot.lane.b32.xlu1 %v2011_v61, %s4690_s21 }
 0x213   : > { %v2134_v9 = vpop.permute.xlu1 %2133 }
 0x21e   : > { %v3802_v62 = vpop.f32.mrb[8].mxu0 }
 0x21f   : > { %v2003_v63 = vpop.f32.mrb[8].mxu1  ;;  %v3803_v0 = vpop.f32.mrb[9].mxu0 }
 0x220   : > { %v3804_v1 = vadd.f32 %v3803_v0, %v3802_v62  ;;  %v3890_v2 = vpop.f32.mrb[9].mxu1  ;;  %v3805_v3 = vpop.f32.mrb[10].mxu0 }
 0x221   : > { %v2006_v4 = vpop.f32.mrb[10].mxu1  ;;  %v3806_v6 = vpop.f32.mrb[11].mxu0 }
 0x222   : > { %v4969_v7 = vadd.f32 %v3804_v1, %v2003_v63  ;;  %v3891_v8 = vpop.f32.mrb[11].mxu1 }
 0x224   : > { %v2017_v15 = vpack.c.bf16 %v4969_v7, %v4969_v7 }
 0x273   : > { %v2356_v11 = vpop.permute.xlu1 %2355 }
 0x274   : > { %v2361_v12 = vsel %vm2024_vm1, %v2356_v11, 0 }
 0x275   : > { %3929 = vmatpush3.bf16.xpose.msra.mxu0 %v2361_v12  ;;  %v2016_v12 = vpack.c.bf16 %v4955_v52, %v4955_v52 }
 0x276   : > { %3940 = vmatprep.subr.bf16.mxu0 %v4688_v16 }
 0x277   : > { %v2353_v18 = vpop.permute.xlu1 %2352 }
 0x27b   : > { %v2575_v26 = vpop.permute.xlu1 %2574 }
 0x27c   : > { %3931 = vmatmul.mubr.msk.bf16.vlgmr.msra.gmra.mrb[16].mxu0 %vm2024_vm1, %v2353_v18  ;;  %v2580_v27 = vsel %vm2024_vm1, %v2575_v26, 0 }
 0x27d   : > { %v2065_v21 = vpop.f32.mrb[12].mxu1  ;;  %3941 = vmatpush3.bf16.xpose.msra.mxu0 %v2469_v17  ;;  %3942 = vmatprep.mubr.msk.bf16.mxu0 %vm4689_vm0, %v4688_v16 }
 0x27e   : > { %v2066_v22 = vadd.f32 %v2065_v21, %v4977_v20  ;;  %v3896_v23 = vpop.f32.mrb[13].mxu1  ;;  %3952 = vmatprep.subr.bf16.mxu0 %v4688_v16 }
 0x27f   : > { %v2068_v24 = vpop.f32.mrb[14].mxu1  ;;  %v2572_v28 = vpop.permute.xlu1 %2571 }
 0x280   : > { %v3897_v25 = vpop.f32.mrb[15].mxu1  ;;  %v2072_v48 = vsel %vm2071_vm4, %v2066_v22, -inf }
 0x281   : > { %2073 = vmax.xlane.f32.xlu0 %v2072_v48 }
 0x284   : > { %3943 = vmatmul.mubr.msk.bf16.vlgmr.msra.gmra.mrb[20].mxu0 %vm2024_vm1, %v2011_v61 }
 0x285   : > { %3953 = vmatpush3.bf16.xpose.msra.mxu0 %v2580_v27  ;;  %3954 = vmatprep.mubr.msk.bf16.mxu0 %vm4689_vm0, %v4688_v16 }
 0x28c   : > { %3955 = vmatmul.mubr.msk.bf16.vlgmr.msra.gmra.mrb[24].mxu0 %vm2024_vm1, %v2572_v28 }
 0x297   : > { %2136 = vrot.lane.b32.xlu0 %v4944_v42, %s4690_s21 }
 0x2dc   : > { %v2286_v29 = vpop.f32.mrb[12].mxu0 }
 0x2dd   : > { %v4993_v30 = vadd.f32 %v2286_v29, %v4977_v20  ;;  %v3920_v31 = vpop.f32.mrb[13].mxu0 }
 0x2de   : > { %v2289_v32 = vpop.f32.mrb[14].mxu0  ;;  %v2306_v31 = vsel %vm2085_vm2, %v2016_v12, 0 }
 0x2df   : > { %v3921_v33 = vpop.f32.mrb[15].mxu0  ;;  %v2292_v34 = vsel %vm2071_vm4, %v4993_v30, -inf }
 0x2e0   : > { %2293 = vmax.xlane.f32.xlu0 %v2292_v34 }
 0x2f6   : > { %2195 = vrot.lane.b32.xlu0 %v4953_v51, %s4690_s21 }
 0x30e   : > { %v2074_v35 = vpop.xlane.xlu0 %2073 }
 0x30f   : > { %v2075_v36 = vsub.f32 %v2066_v22, %v2074_v35 }
 0x311   : > { %v2076_v37 = vmul.f32 1.442695, %v2075_v36 }
 0x312   : > { %v2137_v40 = vpop.permute.xlu0 %2136 }
 0x313   : > { %4498 = vpow2.f32 %v2076_v37  ;;  %v2142_v42 = vsel %vm2024_vm1, %v2137_v40, 0 }
 0x31d   : > { %v4999_v39 = vpop.eup %4498 }
 0x31e   : > { %v2081_v41 = vpack.c.bf16 %v4999_v39, %v4999_v39 }
 0x320   : > { %3901 = vmatmul.mubr.msk.bf16.vlgmr.msra.gmra.mrb[16].mxu1 %vm2071_vm4, %v2081_v41  ;;  %v2078_v41 = vsel %vm2071_vm4, %v4999_v39, 0.0 }
 0x321   : > { %3905 = vmatpush3.bf16.xpose.msra.mxu1 %v2142_v42  ;;  %3906 = vmatprep.mubr.msk.bf16.mxu1 %vm4689_vm0, %v4688_v16 }
 0x322   : > { %3910 = vmatprep.subr.bf16.mxu1 %v4688_v16 }
 0x328   : > { %3907 = vmatmul.mubr.msk.bf16.vlgmr.msra.gmra.mrb[20].mxu1 %vm2024_vm1, %v2134_v9 }
 0x329   : > { %3912 = vmatprep.mubr.msk.bf16.mxu1 %vm4689_vm0, %v4688_v16 }
 0x34f   : > { %v2397_v43 = vpop.f32.mrb[16].mxu0 }
 0x350   : > { %v3932_v44 = vpop.f32.mrb[17].mxu0  ;;  %v2398_v4 = vadd.f32 %v2397_v43, %v4977_v20 }
 0x351   : > { %v2400_v45 = vpop.f32.mrb[18].mxu0 }
 0x352   : > { %v3933_v5 = vpop.f32.mrb[19].mxu0  ;;  %v2403_v10 = vsel %vm2071_vm4, %v2398_v4, -inf  ;;  %v2525_v45 = vsel %vm2085_vm2, %v2017_v15, 0 }
 0x357   : > { %v2505_v38 = vpop.f32.mrb[20].mxu0 }
 0x358   : > { %v3944_v46 = vpop.f32.mrb[21].mxu0  ;;  %v2506_v9 = vadd.f32 %v2505_v38, %v4977_v20 }
 0x359   : > { %v2508_v47 = vpop.f32.mrb[22].mxu0 }
 0x35a   : > { %v3945_v49 = vpop.f32.mrb[23].mxu0  ;;  %v2511_v11 = vsel %vm2071_vm4, %v2506_v9, -inf }
 0x35b   : > { %v4402_v49 = vld [vmem:[#allocation7] ss:$12 sps:$4 sm:$0xff]  }
 0x35f   : > { %v2616_v50 = vpop.f32.mrb[24].mxu0 }
 0x360   : > { %v2617_v51 = vadd.f32 %v2616_v50, %v4977_v20  ;;  %v3956_v53 = vpop.f32.mrb[25].mxu0  ;;  %v4404_v50 = vld [vmem:[#allocation7 + $0x4] ss:$12 sps:$4 sm:$0xff]  }
 0x361   : > { %v2619_v54 = vpop.f32.mrb[26].mxu0  ;;  %3202 = vmatprep.subr.bf16.mxu0 %v4404_v50  ;;  %v4405_v53 = vld [vmem:[#allocation7 + $0x18] ss:$12 sps:$4 sm:$0xff]  }
 0x362   : > { %v3957_v55 = vpop.f32.mrb[27].mxu0  ;;  %v2622_v56 = vsel %vm2071_vm4, %v2617_v51, -inf  ;;  %3203 = vmatpush1.bf16.msra.mxu0 %v4402_v49  ;;  %v4410_v54 = vld [vmem:[#allocation7 + $0x34] ss:$12 sps:$4 sm:$0xff]  }
 0x363   : > { %2623 = vmax.xlane.f32.xlu0 %v2622_v56  ;;  %v4429_v55 = vld [vmem:[#allocation7 + $0xc8] ss:$12 sps:$4 sm:$0xff]  }
 0x364   : > { %v4430_v56 = vld [vmem:[#allocation7 + $0x8] ss:$12 sps:$4 sm:$0xff]  }
 0x36d   : > { %v2294_v57 = vpop.xlane.xlu0 %2293 }
 0x36e   : > { %v2295_v21 = vsub.f32 %v4993_v30, %v2294_v57  ;;  %v4408_v57 = vld [vmem:[#allocation7 + $0x30] ss:$12 sps:$4 sm:$0xff]  }
 0x370   : > { %v2296_v48 = vmul.f32 1.442695, %v2295_v21  ;;  %v4443_v21 = vld [vmem:[#allocation7 + $0x10c] ss:$12 sps:$4 sm:$0xff]  }
 0x371   : > { %v2196_v58 = vpop.permute.xlu0 %2195 }
 0x372   : > { %v2201_v59 = vsel %vm2085_vm2, %v2196_v58, 0  ;;  %v4434_v58 = vld [vmem:[#allocation7 + $0xe0] ss:$12 sps:$4 sm:$0xff]  }
 0x373   : > { %3911 = vmatpush3.bf16.msra.mxu1 %v2201_v59  ;;  %v4413_v59 = vld [vmem:[#allocation7 + $0x4c] ss:$12 sps:$4 sm:$0xff]  }
 0x374   : > { %3922 = vmatprep.subr.bf16.mxu1 %v4688_v16 }
 0x3f0   : > { %v2624_v17 = vpop.xlane.xlu0 %2623 }
 0x3f1   : > { %v2625_v18 = vsub.f32 %v2617_v51, %v2624_v17  ;;  %v4407_v51 = vld [vmem:[#allocation7 + $0x1c] ss:$12 sps:$4 sm:$0xff]  }
 0x3f2   : > { %3204 = vmatprep.subr.bf16.mxu0 %v4407_v51  ;;  %v4433_v17 = vld [vmem:[#allocation7 + $0xdc] ss:$12 sps:$4 sm:$0xff]  }
 0x3f3   : > { %v5015_v60 = vpop.f32.mrb[16].mxu1  ;;  %v2626_v22 = vmul.f32 1.442695, %v2625_v18  ;;  %3205 = vmatpush1.bf16.msra.mxu0 %v4405_v53  ;;  %v4431_v18 = vld [vmem:[#allocation7 + $0xd8] ss:$12 sps:$4 sm:$0xff]  }
 0x3f4   : > { %v3902_v61 = vpop.f32.mrb[17].mxu1  ;;  %3206 = vmatprep.subr.bf16.mxu0 %v4410_v54 }
 0x3f5   : > { %v2126_v62 = vpop.f32.mrb[18].mxu1  ;;  %v4435_v61 = vld [vmem:[#allocation7 + $0x20] ss:$12 sps:$4 sm:$0xff]  }
 0x3f6   : > { %v3903_v63 = vpop.f32.mrb[19].mxu1  ;;  %v4439_v62 = vld [vmem:[#allocation7 + $0xf8] ss:$12 sps:$4 sm:$0xff]  }
 0x3f7   : > { %3207 = vmatpush1.bf16.msra.mxu0 %v4408_v57  ;;  %v4411_v63 = vld [vmem:[#allocation7 + $0x48] ss:$12 sps:$4 sm:$0xff]  }
 0x3f8   : > { %3208 = vmatprep.subr.bf16.mxu0 %v4413_v59 }
 0x3fb   : > { %v2178_v0 = vpop.f32.mrb[20].mxu1  ;;  %3209 = vmatpush1.bf16.msra.mxu0 %v4411_v63 }
 0x3fc   : > { %v2179_v1 = vadd.f32 %v2178_v0, %v4977_v20  ;;  %v3908_v2 = vpop.f32.mrb[21].mxu1  ;;  %v4416_v0 = vld [vmem:[#allocation7 + $0x64] ss:$12 sps:$4 sm:$0xff]  }
 0x3fd   : > { %v2181_v3 = vpop.f32.mrb[22].mxu1  ;;  %v4444_v2 = vld [vmem:[#allocation7 + $0x110] ss:$12 sps:$4 sm:$0xff]   ;;  %3210 = vmatprep.subr.bf16.mxu0 %v4416_v0 }
 0x3fe   : > { %v3909_v6 = vpop.f32.mrb[23].mxu1  ;;  %v2184_v8 = vsel %vm2071_vm4, %v2179_v1, -inf  ;;  %v4414_v3 = vld [vmem:[#allocation7 + $0x60] ss:$12 sps:$4 sm:$0xff]  }
 0x3ff   : > { %2185 = vmax.xlane.f32.xlu1 %v2184_v8  ;;  %3211 = vmatpush1.bf16.msra.mxu0 %v4414_v3  ;;  %v4417_v6 = vld [vmem:[#allocation7 + $0x78] ss:$12 sps:$4 sm:$0xff]   ;;  %v4422_v8 = vld [vmem:[#allocation7 + $0x94] ss:$12 sps:$4 sm:$0xff]  }
 0x403   : > { %2404 = vmax.xlane.f32.xlu1 %v2403_v10  ;;  %v4425_v10 = vld [vmem:[#allocation7 + $0xac] ss:$12 sps:$4 sm:$0xff]  }
 0x407   : > { %2512 = vmax.xlane.f32.xlu1 %v2511_v11  ;;  %v4423_v11 = vld [vmem:[#allocation7 + $0xa8] ss:$12 sps:$4 sm:$0xff]  }
 0x418   : > { %2414 = vrot.lane.b32.xlu1 %v2016_v12, %s4690_s21  ;;  %v4428_v12 = vld [vmem:[#allocation7 + $0xc4] ss:$12 sps:$4 sm:$0xff]  }
 0x41c   : > { %2633 = vrot.lane.b32.xlu1 %v2017_v15, %s4690_s21  ;;  %v4426_v15 = vld [vmem:[#allocation7 + $0xc0] ss:$12 sps:$4 sm:$0xff]  }
 0x48c   : > { %v2186_v19 = vpop.xlane.xlu1 %2185 }
 0x48d   : > { %v2187_v20 = vsub.f32 %v2179_v1, %v2186_v19  ;;  %v4440_v1 = vld [vmem:[#allocation7 + $0x38] ss:$12 sps:$4 sm:$0xff]   ;;  %v4438_v19 = vld [vmem:[#allocation7 + $0xf4] ss:$12 sps:$4 sm:$0xff]  }
 0x48f   : > { %v2188_v23 = vmul.f32 1.442695, %v2187_v20  ;;  %v4436_v20 = vld [vmem:[#allocation7 + $0xf0] ss:$12 sps:$4 sm:$0xff]  }
 0x490   : > { %v2405_v24 = vpop.xlane.xlu1 %2404 }
 0x491   : > { %4500 = vpow2.f32 %v2188_v23  ;;  %v2406_v25 = vsub.f32 %v2398_v4, %v2405_v24  ;;  %v4419_v4 = vld [vmem:[#allocation7 + $0x7c] ss:$12 sps:$4 sm:$0xff]  }
 0x492   : > { %4502 = vpow2.f32 %v2626_v22  ;;  %3212 = vmatprep.subr.bf16.mxu0 %v4419_v4  ;;  %v4441_v22 = vld [vmem:[#allocation7 + $0x108] ss:$12 sps:$4 sm:$0xff]   ;;  %v4445_v24 = vld [vmem:[#allocation7 + $0x50] ss:$12 sps:$4 sm:$0xff]  }
 0x493   : > { %v2407_v52 = vmul.f32 1.442695, %v2406_v25  ;;  %3213 = vmatpush1.bf16.msra.mxu0 %v4417_v6  ;;  %v4446_v25 = vld [vmem:[#allocation7 + $0x120] ss:$12 sps:$4 sm:$0xff]  }
 0x494   : > { %v2513_v7 = vpop.xlane.xlu1 %2512  ;;  %3214 = vmatprep.subr.bf16.mxu0 %v4422_v8 }
 0x495   : > { %4504 = vpow2.f32 %v2407_v52  ;;  %v2514_v32 = vsub.f32 %v2506_v9, %v2513_v7  ;;  %v4420_v9 = vld [vmem:[#allocation7 + $0x90] ss:$12 sps:$4 sm:$0xff]   ;;  %v4449_v52 = vld [vmem:[#allocation7 + $0x128] ss:$12 sps:$4 sm:$0xff]  }
 0x496   : > { %4506 = vpow2.f32 %v2296_v48  ;;  %v4448_v48 = vld [vmem:[#allocation7 + $0x124] ss:$12 sps:$4 sm:$0xff]   ;;  %v4453_v7 = vld [vmem:[#allocation7 + $0x13c] ss:$12 sps:$4 sm:$0xff]  }
 0x497   : > { %v2515_v36 = vmul.f32 1.442695, %v2514_v32  ;;  %3215 = vmatpush1.bf16.msra.mxu0 %v4420_v9  ;;  %v4456_v32 = vld [vmem:[#allocation7 + $0x150] ss:$12 sps:$4 sm:$0xff]  }
 0x498   : > { %v2415_v37 = vpop.permute.xlu1 %2414  ;;  %3216 = vmatprep.subr.bf16.mxu0 %v4425_v10 }
 0x499   : > { %v2420_v43 = vsel %vm2085_vm2, %v2415_v37, 0  ;;  %4508 = vpow2.f32 %v2515_v36  ;;  %v4463_v36 = vld [vmem:[#allocation7 + $0x16c] ss:$12 sps:$4 sm:$0xff]  }
 0x49b   : > { %v4501_v26 = vpop.eup %4500  ;;  %3217 = vmatpush1.bf16.msra.mxu0 %v4423_v11 }
 0x49c   : > { %v2190_v27 = vsel %vm2071_vm4, %v4501_v26, 0.0  ;;  %v2193_v28 = vpack.c.bf16 %v4501_v26, %v4501_v26  ;;  %v4503_v29 = vpop.eup %4502  ;;  %v2634_v5 = vpop.permute.xlu1 %2633  ;;  %3218 = vmatprep.subr.bf16.mxu0 %v4428_v12  ;;  %v4450_v26 = vld [vmem:[#allocation7 + $0x68] ss:$12 sps:$4 sm:$0xff]  }
 0x49d   : > { %2191 = vadd.xlane.f32.xlu0 %v2190_v27  ;;  %v2628_v33 = vsel %vm2071_vm4, %v4503_v29, 0.0  ;;  %v2639_v46 = vsel %vm2085_vm2, %v2634_v5, 0  ;;  %v2631_v47 = vpack.c.bf16 %v4503_v29, %v4503_v29  ;;  %v4454_v27 = vld [vmem:[#allocation7 + $0x140] ss:$12 sps:$4 sm:$0xff]   ;;  %v4461_v5 = vld [vmem:[#allocation7 + $0x168] ss:$12 sps:$4 sm:$0xff]  }
 0x49e   : > { %3913 = vmatmul.mubr.msk.bf16.vlgmr.msra.gmra.mrb[24].mxu1 %vm2071_vm4, %v2193_v28  ;;  %v4451_v28 = vld [vmem:[#allocation7 + $0x138] ss:$12 sps:$4 sm:$0xff]   ;;  %v4455_v29 = vld [vmem:[#allocation7 + $0x80] ss:$12 sps:$4 sm:$0xff]  }
 0x49f   : > { %v4505_v30 = vpop.eup %4504  ;;  %3923 = vmatpush3.bf16.msra.mxu1 %v2306_v31  ;;  %3924 = vmatprep.mubr.msk.bf16.mxu1 %vm4689_vm0, %v4688_v16  ;;  %v4458_v31 = vld [vmem:[#allocation7 + $0x154] ss:$12 sps:$4 sm:$0xff]  }
 0x4a0   : > { %v2409_v34 = vsel %vm2071_vm4, %v4505_v30, 0.0  ;;  %3934 = vmatprep.subr.bf16.mxu1 %v4688_v16  ;;  %v4507_v35 = vpop.eup %4506  ;;  %v2412_v44 = vpack.c.bf16 %v4505_v30, %v4505_v30  ;;  %3219 = vmatpush1.bf16.msra.mxu0 %v4426_v15  ;;  %v4459_v30 = vld [vmem:[#allocation7 + $0x158] ss:$12 sps:$4 sm:$0xff]  }
 0x4a1   : > { %2629 = vadd.xlane.f32.xlu0 %v2628_v33  ;;  %2410 = vadd.xlane.f32.xlu1 %v2409_v34  ;;  %v2298_v40 = vsel %vm2071_vm4, %v4507_v35, 0.0  ;;  %v2301_v42 = vpack.c.bf16 %v4507_v35, %v4507_v35  ;;  %v4460_v35 = vld [vmem:[#allocation7 + $0x98] ss:$12 sps:$4 sm:$0xff]  }
 0x4a2   : > { %3220 = vmatprep.subr.bf16.mxu0 %v4433_v17 }
 0x4a3   : > { %v5051_v39 = vpop.eup %4508 }
 0x4a4   : > { %v2520_v38 = vpack.c.bf16 %v5051_v39, %v5051_v39  ;;  %3221 = vmatpush1.bf16.msra.mxu0 %v4431_v18  ;;  %v2517_v11 = vsel %vm2071_vm4, %v5051_v39, 0.0 }
 0x4a5   : > { %2299 = vadd.xlane.f32.xlu0 %v2298_v40  ;;  %2079 = vadd.xlane.f32.xlu1 %v2078_v41  ;;  %v4464_v41 = vld [vmem:[#allocation7 + $0x170] ss:$12 sps:$4 sm:$0xff]  }
 0x4a6   : > { %3925 = vmatmul.mubr.msk.bf16.vlgmr.msra.gmra.mrb[28].mxu1 %vm2071_vm4, %v2301_v42  ;;  %3222 = vmatprep.subr.bf16.mxu0 %v4438_v19 }
 0x4a7   : > { %3935 = vmatpush3.bf16.msra.mxu1 %v2420_v43  ;;  %3936 = vmatprep.mubr.msk.bf16.mxu1 %vm4689_vm0, %v4688_v16 }
 0x4a8   : > { %3946 = vmatprep.subr.bf16.mxu1 %v4688_v16  ;;  %3223 = vmatpush1.bf16.msra.mxu0 %v4436_v20 }
 0x4a9   : > { %3224 = vmatprep.subr.bf16.mxu0 %v4443_v21 }
 0x4ac   : > { %3225 = vmatpush1.bf16.msra.mxu0 %v4441_v22 }
 0x4ad   : > { %3226 = vmatprep.subr.bf16.mxu0 %v4448_v48  ;;  %v4469_v48 = vld [vmem:[#allocation7 + $0x188] ss:$12 sps:$4 sm:$0xff]  }
 0x4ae   : > { %3937 = vmatmul.mubr.msk.bf16.vlgmr.msra.gmra.mrb[32].mxu1 %vm2071_vm4, %v2412_v44 }
 0x4af   : > { %3947 = vmatpush3.bf16.msra.mxu1 %v2525_v45  ;;  %3948 = vmatprep.mubr.msk.bf16.mxu1 %vm4689_vm0, %v4688_v16 }
 0x4b0   : > { %3958 = vmatprep.subr.bf16.mxu1 %v4688_v16  ;;  %3227 = vmatpush1.bf16.msra.mxu0 %v4446_v25  ;;  %v4466_v25 = vld [vmem:[#allocation7 + $0x180] ss:$12 sps:$4 sm:$0xff]  }
 0x4b1   : > { %3228 = vmatprep.subr.bf16.mxu0 %v4453_v7  ;;  %v4470_v7 = vld [vmem:[#allocation7 + $0x198] ss:$12 sps:$4 sm:$0xff]  }
 0x4b4   : > { %3229 = vmatpush1.bf16.msra.mxu0 %v4451_v28  ;;  %v4474_v28 = vld [vmem:[#allocation7 + $0x1b0] ss:$12 sps:$4 sm:$0xff]  }
 0x4b5   : > { %3230 = vmatprep.subr.bf16.mxu0 %v4458_v31  ;;  %v4480_v31 = vld [vmem:[#allocation7 + $0x1cc] ss:$12 sps:$4 sm:$0xff]  }
 0x4b6   : > { %3949 = vmatmul.mubr.msk.bf16.vlgmr.msra.gmra.mrb[36].mxu1 %vm2071_vm4, %v2520_v38  ;;  %v4465_v38 = vld [vmem:[#allocation7 + $0xb0] ss:$12 sps:$4 sm:$0xff]  }
 0x4b7   : > { %3959 = vmatpush3.bf16.msra.mxu1 %v2639_v46  ;;  %3960 = vmatprep.mubr.msk.bf16.mxu1 %vm4689_vm0, %v4688_v16 }
 0x4b8   : > { %3841 = vmatprep.subr.bf16.mxu1 %v4429_v55  ;;  %3231 = vmatpush1.bf16.msra.mxu0 %v4456_v32  ;;  %v4481_v32 = vld [vmem:[#allocation7 + $0x1d0] ss:$12 sps:$4 sm:$0xff]  }
 0x4b9   : > { %3232 = vmatprep.subr.bf16.mxu0 %v4463_v36  ;;  %v4486_v36 = vld [vmem:[#allocation7 + $0x1f8] ss:$12 sps:$4 sm:$0xff]  }
 0x4bc   : > { %3233 = vmatpush1.bf16.msra.mxu0 %v4461_v5 }
 0x4be   : > { %3961 = vmatmul.mubr.msk.bf16.vlgmr.msra.gmra.mrb[40].mxu1 %vm2071_vm4, %v2631_v47 }
 0x4bf   : > { %3842 = vmatpush3.bf16.msra.mxu1 %v4430_v56 }
 0x4c0   : > { %3843 = vmatprep.subr.bf16.mxu1 %v4434_v58 }
 0x4c3   : > { %3844 = vmatpush3.bf16.msra.mxu1 %v4435_v61  ;;  %v4468_v61 = vld [vmem:[#allocation7 + $0x184] ss:$12 sps:$4 sm:$0xff]  }
 0x4c4   : > { %3845 = vmatprep.subr.bf16.mxu1 %v4439_v62  ;;  %3243 = vmatprep.subr.bf16.mxu0 %v4468_v61 }
 0x4c7   : > { %3846 = vmatpush3.bf16.msra.mxu1 %v4440_v1 }
 0x4c8   : > { %3847 = vmatprep.subr.bf16.mxu1 %v4444_v2 }
 0x4cb   : > { %3848 = vmatpush3.bf16.msra.mxu1 %v4445_v24 }
 0x4cc   : > { %3849 = vmatprep.subr.bf16.mxu1 %v4449_v52 }
 0x4cf   : > { %3850 = vmatpush3.bf16.msra.mxu1 %v4450_v26  ;;  %v4472_v26 = vld [vmem:[#allocation7 + $0x19c] ss:$12 sps:$4 sm:$0xff]  }
 0x4d0   : > { %3851 = vmatprep.subr.bf16.mxu1 %v4454_v27  ;;  %v4473_v27 = vld [vmem:[#allocation7 + $0x1a0] ss:$12 sps:$4 sm:$0xff]  }
 0x4d3   : > { %3852 = vmatpush3.bf16.msra.mxu1 %v4455_v29  ;;  %v4477_v29 = vld [vmem:[#allocation7 + $0x1b8] ss:$12 sps:$4 sm:$0xff]  }
 0x4d4   : > { %3853 = vmatprep.subr.bf16.mxu1 %v4459_v30  ;;  %v4478_v30 = vld [vmem:[#allocation7 + $0x1c8] ss:$12 sps:$4 sm:$0xff]  }
 0x4d7   : > { %3854 = vmatpush3.bf16.msra.mxu1 %v4460_v35  ;;  %v4488_v35 = vld [vmem:[#allocation7 + $0x1fc] ss:$12 sps:$4 sm:$0xff]  }
 0x4d8   : > { %3855 = vmatprep.subr.bf16.mxu1 %v4464_v41  ;;  %v4490_v41 = vld [vmem:[#allocation7 + $0x210] ss:$12 sps:$4 sm:$0xff]  }
 0x4db   : > { %3856 = vmatpush3.bf16.msra.mxu1 %v4465_v38 }
 0x4dc   : > { %3964 = vmatprep.subr.bf16.mxu1 %v4688_v16 }
 0x52a   : > { %v2192_v23 = vpop.xlane.xlu0 %2191 }
 0x52b   : > { %4510 = vrcp.f32 %v2192_v23 }
 0x52e   : > { %v2411_v43 = vpop.xlane.xlu1 %2410  ;;  %v2630_v57 = vpop.xlane.xlu0 %2629 }
 0x52f   : > { %4512 = vrcp.f32 %v2411_v43  ;;  %v4496_v43 = vld [vmem:[#allocation7 + $0x22c] ss:$12 sps:$4 sm:$0xff]  }
 0x530   : > { %4514 = vrcp.f32 %v2630_v57  ;;  %v2801_v57 = vld [vmem:[%s5141_s3] sm:$0x7] }
 0x532   : > { %v2080_v12 = vpop.xlane.xlu1 %2079  ;;  %v2300_v15 = vpop.xlane.xlu0 %2299 }
 0x533   : > { %4516 = vrcp.f32 %v2080_v12 }
 0x534   : > { %4518 = vrcp.f32 %v2300_v15 }
 0x535   : > { %v4511_v33 = vpop.eup %4510 }
 0x539   : > { %v4513_v51 = vpop.eup %4512 }
 0x53a   : > { %v4515_v2 = vpop.eup %4514 }
 0x53d   : > { %v4517_v17 = vpop.eup %4516 }
 0x53e   : > { %v4519_v18 = vpop.eup %4518  ;;  %v2130_v20 = vmul.f32 %v4517_v17, %v5015_v60  ;;  %v4476_v60 = vld [vmem:[#allocation7 + $0x1b4] ss:$12 sps:$4 sm:$0xff]  }
 0x540   : > { %v2131_v23 = vpack.c.bf16 %v2130_v20, %v2130_v20 }
 0x571   : > { %v2237_v34 = vpop.f32.mrb[24].mxu1 }
 0x572   : > { %v2244_v37 = vmul.f32 %v4511_v33, %v2237_v34  ;;  %v3914_v40 = vpop.f32.mrb[25].mxu1  ;;  %v4484_v33 = vld [vmem:[#allocation7 + $0x1e4] ss:$12 sps:$4 sm:$0xff]   ;;  %v4485_v34 = vld [vmem:[#allocation7 + $0x1e8] ss:$12 sps:$4 sm:$0xff]  }
 0x573   : > { %v2240_v42 = vpop.f32.mrb[26].mxu1  ;;  %v4492_v40 = vld [vmem:[#allocation7 + $0x214] ss:$12 sps:$4 sm:$0xff]  }
 0x574   : > { %v2245_v44 = vpack.c.bf16 %v2244_v37, %v2244_v37  ;;  %v3915_v45 = vpop.f32.mrb[27].mxu1  ;;  %v4489_v37 = vld [vmem:[#allocation7 + $0x200] ss:$12 sps:$4 sm:$0xff]   ;;  %v4493_v42 = vld [vmem:[#allocation7 + $0x218] ss:$12 sps:$4 sm:$0xff]  }
 0x575   : > { %v4497_v45 = vld [vmem:[#allocation7 + $0x230] ss:$12 sps:$4 sm:$0xff]  }
 0x576   : > { %2685 = vrot.lane.b32.xlu1 %v2245_v44, %s4690_s21  ;;  %v4494_v44 = vld [vmem:[#allocation7 + $0x228] ss:$12 sps:$4 sm:$0xff]  }
 0x579   : > { %v2342_v46 = vpop.f32.mrb[28].mxu1 }
 0x57a   : > { %v3926_v47 = vpop.f32.mrb[29].mxu1  ;;  %v2349_v19 = vmul.f32 %v4519_v18, %v2342_v46 }
 0x57b   : > { %v2345_v49 = vpop.f32.mrb[30].mxu1 }
 0x57c   : > { %v3927_v50 = vpop.f32.mrb[31].mxu1  ;;  %v2350_v21 = vpack.c.bf16 %v2349_v19, %v2349_v19 }
 0x581   : > { %v2456_v53 = vpop.f32.mrb[32].mxu1 }
 0x582   : > { %v2463_v54 = vmul.f32 %v4513_v51, %v2456_v53  ;;  %v3938_v55 = vpop.f32.mrb[33].mxu1 }
 0x583   : > { %v2459_v56 = vpop.f32.mrb[34].mxu1 }
 0x584   : > { %v2464_v58 = vpack.c.bf16 %v2463_v54, %v2463_v54  ;;  %v3939_v59 = vpop.f32.mrb[35].mxu1  ;;  %v2813_v56 = vsub.s32 2, %v4972_v14 }
 0x585   : > { %v2809_v59 = vsub.s32 1, %v4972_v14 }
 0x586   : > { %2688 = vrot.lane.b32.xlu0 %v2464_v58, %s4690_s21  ;;  %v2805_v58 = vsub.s32 0, %v4972_v14  ;;  %v2814_v61 = vrot.slane %v2801_v57, %v2813_v56 }
 0x589   : > { %v5063_v62 = vpop.f32.mrb[36].mxu1 }
 0x58a   : > { %v3950_v63 = vpop.f32.mrb[37].mxu1 }
 0x58b   : > { %v2564_v0 = vpop.f32.mrb[38].mxu1  ;;  %v2810_v63 = vrot.slane %v2801_v57, %v2809_v59 }
 0x58c   : > { %v3951_v1 = vpop.f32.mrb[39].mxu1 }
 0x591   : > { %v2675_v3 = vpop.f32.mrb[40].mxu1 }
 0x592   : > { %v2682_v4 = vmul.f32 %v4515_v2, %v2675_v3  ;;  %v3962_v6 = vpop.f32.mrb[41].mxu1 }
 0x593   : > { %v2678_v8 = vpop.f32.mrb[42].mxu1 }
 0x594   : > { %v2683_v9 = vpack.c.bf16 %v2682_v4, %v2682_v4  ;;  %v3963_v10 = vpop.f32.mrb[43].mxu1 }
 0x596   : > { %2691 = vrot.lane.b32.xlu0 %v2683_v9, %s4690_s21 }
 0x59a   : > { %2518 = vadd.xlane.f32.xlu1 %v2517_v11 }
 0x5e8   : > { %v2686_v22 = vpop.permute.xlu1 %2685 }
 0x5e9   : > { %v2695_v39 = vsel %vm2024_vm1, %v2131_v23, %v2686_v22 }
 0x5f8   : > { %v2689_v24 = vpop.permute.xlu0 %2688 }
 0x5f9   : > { %v2699_v52 = vsel %vm2024_vm1, %v2350_v21, %v2689_v24 }
 0x5fa   : > { %3234 = vmatprep.mubr.bf16.mxu0 %v2699_v52  ;;  %3316 = vmatprep.mubr.bf16.mxu1 %v2699_v52 }
 0x5fb   : > { %3235 = vmatmul.mubr.bf16.vlgmr.msra.gmra.mrb[28].mxu0 %v2695_v39  ;;  %3317 = vmatmul.mubr.bf16.vlgmr.msra.gmra.mrb[44].mxu1 %v2695_v39 }
 0x5fc   : > { %3244 = vmatpush1.bf16.msra.mxu0 %v4466_v25  ;;  %3965 = vmatpush3.bf16.msra.mxu1 %v4469_v48 }
 0x5fd   : > { %3245 = vmatprep.subr.bf16.mxu0 %v4472_v26  ;;  %3966 = vmatprep.subr.bf16.mxu1 %v4688_v16 }
 0x5fe   : > { %3275 = vmatprep.mubr.bf16.mxu0 %v4687_v13  ;;  %3980 = vmatprep.mubr.msk.bf16.mxu1 %vm4689_vm0, %v4688_v16  ;;  %v4482_v13 = vld [vmem:[#allocation7 + $0x1e0] ss:$12 sps:$4 sm:$0xff]  }
 0x600   : > { %3246 = vmatpush1.bf16.msra.mxu0 %v4470_v7  ;;  %3967 = vmatpush3.bf16.msra.mxu1 %v4473_v27 }
 0x601   : > { %3247 = vmatprep.subr.bf16.mxu0 %v4476_v60  ;;  %3968 = vmatprep.subr.bf16.mxu1 %v4688_v16 }
 0x604   : > { %3248 = vmatpush1.bf16.msra.mxu0 %v4474_v28  ;;  %3969 = vmatpush3.bf16.msra.mxu1 %v4477_v29 }
 0x605   : > { %3249 = vmatprep.subr.bf16.mxu0 %v4480_v31  ;;  %3970 = vmatprep.subr.bf16.mxu1 %v4688_v16 }
 0x608   : > { %3250 = vmatpush1.bf16.msra.mxu0 %v4478_v30  ;;  %3971 = vmatpush3.bf16.msra.mxu1 %v4481_v32  ;;  %v2692_v49 = vpop.permute.xlu0 %2691 }
 0x609   : > { %3251 = vmatprep.subr.bf16.mxu0 %v4484_v33  ;;  %3972 = vmatprep.subr.bf16.mxu1 %v4688_v16 }
 0x60c   : > { %3252 = vmatpush1.bf16.msra.mxu0 %v4482_v13  ;;  %3973 = vmatpush3.bf16.msra.mxu1 %v4485_v34 }
 0x60d   : > { %3253 = vmatprep.subr.bf16.mxu0 %v4488_v35  ;;  %3974 = vmatprep.subr.bf16.mxu1 %v4688_v16 }
 0x610   : > { %3254 = vmatpush1.bf16.msra.mxu0 %v4486_v36  ;;  %3975 = vmatpush3.bf16.msra.mxu1 %v4489_v37 }
 0x611   : > { %3255 = vmatprep.subr.bf16.mxu0 %v4492_v40  ;;  %3976 = vmatprep.subr.bf16.mxu1 %v4688_v16 }
 0x614   : > { %3256 = vmatpush1.bf16.msra.mxu0 %v4490_v41  ;;  %3977 = vmatpush3.bf16.msra.mxu1 %v4493_v42 }
 0x615   : > { %3257 = vmatprep.subr.bf16.mxu0 %v4496_v43  ;;  %3978 = vmatprep.subr.bf16.mxu1 %v4688_v16 }
 0x618   : > { %3258 = vmatpush1.bf16.msra.mxu0 %v4494_v44  ;;  %3979 = vmatpush3.bf16.msra.mxu1 %v4497_v45 }
 0x627   : > { %v2519_v5 = vpop.xlane.xlu1 %2518 }
 0x628   : > { %4520 = vrcp.f32 %v2519_v5 }
 0x632   : > { %v4521_v38 = vpop.eup %4520 }
 0x633   : > { %v2568_v46 = vmul.f32 %v4521_v38, %v5063_v62  ;;  %v2806_v62 = vrot.slane %v2801_v57, %v2805_v58 }
 0x635   : > { %v2569_v47 = vpack.c.bf16 %v2568_v46, %v2568_v46 }
 0x637   : > { %v2703_v50 = vsel %vm2024_vm1, %v2569_v47, %v2692_v49 }
 0x638   : > { %3276 = vmatmul.mubr.bf16.vlgmr.msra.gmra.mrb[28].mxu0 %v2703_v50  ;;  %3981 = vmatmul.mubr.bf16.vlgmr.msra.gmra.mrb[48].mxu1 %v2703_v50 }
 0x6ce   : > { %v3857_v51 = vpop.f32.mrb[44].mxu1 }
 0x6cf   : > { %v3858_v53 = vpop.f32.mrb[45].mxu1 }
 0x6d0   : > { %v3859_v54 = vadd.f32 %v3858_v53, %v3857_v51  ;;  %v3860_v55 = vpop.f32.mrb[46].mxu1 }
 0x6d1   : > { %v3861_v16 = vpop.f32.mrb[47].mxu1 }
 0x6d2   : > { %v3319_v0 = vadd.f32 %v3859_v54, %v2814_v61 }
 0x70b   : > { %v3277_v1 = vpop.f32.mrb[28].mxu0  ;;  %v3358_v2 = vpop.f32.mrb[48].mxu1 }
 0x70c   : > { %v3984_v3 = vadd.f32 %v3277_v1, %v2806_v62  ;;  %v3359_v4 = vadd.f32 %v3358_v2, %v3319_v0  ;;  %v3279_v6 = vpop.f32.mrb[29].mxu0  ;;  %v3982_v8 = vpop.f32.mrb[49].mxu1 }
 0x70d   : > { %v3985_v9 = vadd.f32 %v3279_v6, %v2810_v63  ;;  %v3281_v10 = vpop.f32.mrb[30].mxu0  ;;  %v3361_v11 = vpop.f32.mrb[50].mxu1 }
 0x70e   : > { %3364 = vst [vmem:[%s242_s7] sm:$0xff] %v3984_v3  ;;  %3366 = vst [vmem:[%s242_s7 + $0x10] sm:$0xff] %v3359_v4  ;;  %v3282_v14 = vpop.f32.mrb[31].mxu0  ;;  %v3983_v12 = vpop.f32.mrb[51].mxu1 }
 0x70f   : > { %3365 = vst [vmem:[%s242_s7 + $0x8] sm:$0xff] %v3985_v9 }
 0x710   : > { %4621 = shalt.err (!%p4618_p2)
}
 0x711   : > { %s4622_s6 = scalar_lea.hbm %s5094_s26, 384  ;;  %s4626_s21 = scalar_lea.hbm %s5142_s4, 768 }
 0x712   : > { %p4623_p13 = scmp.ne.s32.totalorder %s5094_s26, %s4622_s6  ;;  %p4627_p4 = scmp.lt.u32.totalorder %s5094_s26, %s5142_s4 }
 0x713   : > { %p4628_p7 = scmp.lt.u32.totalorder %s4626_s21, %s4622_s6  ;;  %p4630_p11 = scmp.lt.u32.totalorder %s4622_s6, %s5094_s26 }
 0x714   : > { %p4624_p6 = pnand %p4623_p13, %p5156_p0 }
 0x715   : > { %p4629_p8 = por %p4628_p7, %p4627_p4 }
 0x716   : > { %p4625_p10 = pneg %p4624_p6 }
 0x717   : > { %p4631_p1 = por %p4630_p11, %p4629_p8 }
 0x719   : > { %p4632_p3 = pnand %p4631_p1, %p4625_p10 }
 0x71b   : > { %4635 = shalt.err (!%p4632_p3)
}
 0x71c   : > { %4021 = dma.vmem_to_hbm [thread:$0]  (%p5156_p0), %s5096_s12, 384, %s5094_s26, %s3368_s19  }
 0x71d PF: > { %s3394_s5 = sand.u32 1, %s4666_s15   ;;  %p5157_p5 = scmp.ne.s32.totalorder %s5147_s22, 0 }
 0x71e   : > { %p5158_p9 = scmp.ge.s32.totalorder %s4678_s18, 2  ;;  %s3395_s25 = scalar_lea.sflag [#allocation4], %s3394_s5 }
 0x720   : > { %p4035_p12 = pnand %p5158_p9, %p5157_p5 }
 0x722   : > { %4661 = dma.done.wait (!%p4035_p12), %s3395_s25, 384  }
 0x723   : > { %4663 = vsyncadd (!%p4035_p12), %s3395_s25, 4294966912  ;;  %p18_p2 = scmp.ge.s32.totalorder %s4828_s11, 4   ;;  %s5159_s15 = smov %s4670_s16 }
 0x724   : > { %s5160_s16 = smov %s4674_s17  ;;  %s5161_s17 = smov %s4837_s14 }
 0x725   : > { %s5162_s18 = smov %s4828_s11  ;;  %20 = sbr.rel (!%p18_p2) target bundleno = 6 (0x6), region = 89 }
 0x72c   :  { %3400 = vsyncpa [#allocation3], 1 }
 0x72d   :  { %3402 = vsyncpa [#allocation3 + $0x1], 1 }
 0x72e   :  { %3403 = vsyncpa [#allocation6], 1 }
 0x72f   :  { %3404 = vsyncpa [#allocation4], 1 }
 0x730   :  { %3406 = vsyncpa [#allocation4 + $0x1], 1 }

</bundles_post_ra>
